<compile_context>
chip_gen: v5e
topology: v5e:2x2
jax: 0.10.0
libtpu: 0.0.40
codegen_flags: <defaults>
</compile_context>

<pallas_src>
import functools
import math
from collections import namedtuple

import jax
import jax.numpy as jnp
import numpy as np
from jax import lax
from jax.experimental import pallas as pl
from jax.experimental.pallas import tpu as pltpu


# ------------------------------ Pallas kernel ------------------------------ #

def _bottleneck_kernel(x_ref, w1_ref, b1_ref, w2_ref, b2_ref, mask_ref,
                       w3_ref, b3_ref, *rest, ho, wo, pad_off, has_down):
    """One full bottleneck block for one image, all intermediates in VMEM.

    x_ref    : (M, Cin)       rows of one image (M = Ho*Wo)
    w1_ref   : (Cin, Cb)      1x1 conv1 weight, BN1 scale folded in
    b1_ref   : (1, Cb)        BN1 folded bias
    w2_ref   : (9, Cb, Cb)    3x3 conv2 taps (kh*3+kw, Cin, Cout), BN2 folded
    b2_ref   : (1, Cb)
    mask_ref : (9, M, 1)      1.0 where tap (dh,dw) reads an in-bounds pixel
    w3_ref   : (Cb, Cout)     1x1 conv3 weight, BN3 folded
    b3_ref   : (1, Cout)
    wd_ref   : (Cin, Cout)    optional 1x1 downsample weight, BNd folded
    bd_ref   : (1, Cout)
    o_ref    : (M, Cout)
    tpad_ref : (M+2*pad_off, Cb) VMEM scratch holding the zero-padded conv1 out
    """
    if has_down:
        wd_ref, bd_ref, o_ref, tpad_ref = rest
    else:
        o_ref, tpad_ref = rest

    f32 = jnp.float32
    x = x_ref[...]                                       # (M, Cin)
    cdt = x.dtype
    m = ho * wo
    cb = w1_ref.shape[-1]

    # ---- conv1 (1x1; stride handled outside) + BN1 + ReLU ------------------
    t = jnp.dot(x, w1_ref[...], preferred_element_type=f32) + b1_ref[...]
    t = jnp.maximum(t, 0.0).astype(cdt)                  # (M, Cb)

    # Zero-padded copy so the 3x3 conv reads shifted windows without leaving
    # VMEM.  Interior store is sublane-aligned (pad_off, M multiples of 8).
    tpad_ref[...] = jnp.zeros_like(tpad_ref)
    tpad_ref[pad_off:pad_off + m, :] = t

    # ---- conv2 (3x3, pad=1, stride=1): 9 accumulated shifted matmuls -------
    acc = jnp.zeros((m, cb), f32)
    k = 0
    for dh in (-1, 0, 1):
        for dw in (-1, 0, 1):
            delta = dh * wo + dw
            src = tpad_ref[pad_off + delta:pad_off + delta + m, :]
            contrib = jnp.dot(src, w2_ref[k], preferred_element_type=f32)
            if dw != 0:
                # kill rows whose W index wrapped around the image boundary
                contrib = contrib * mask_ref[k]
            acc = acc + contrib
            k += 1
    t2 = jnp.maximum(acc + b2_ref[...], 0.0).astype(cdt)  # (M, Cb)

    # ---- conv3 (1x1) + BN3 --------------------------------------------------
    y = jnp.dot(t2, w3_ref[...], preferred_element_type=f32) + b3_ref[...]

    # ---- residual branch (1x1 downsample + BN, or identity) ----------------
    if has_down:
        res = jnp.dot(x, wd_ref[...], preferred_element_type=f32) + bd_ref[...]
    else:
        res = x.astype(f32)

    o_ref[...] = jnp.maximum(y + res, 0.0).astype(o_ref.dtype)


# ----------------------------- kernel wrapper ------------------------------ #

def _full_spec(a):
    nd = a.ndim
    return pl.BlockSpec(a.shape, lambda b, _nd=nd: (0,) * _nd)


@functools.lru_cache(maxsize=None)
def _conv3x3_mask(ho, wo):
    """(9, Ho*Wo, 1) float32: 1.0 where tap (dh,dw) hits an in-bounds pixel."""
    hh, ww = np.meshgrid(np.arange(ho), np.arange(wo), indexing='ij')
    hh = hh.reshape(-1)
    ww = ww.reshape(-1)
    masks = []
    for dh in (-1, 0, 1):
        for dw in (-1, 0, 1):
            ok = ((hh + dh >= 0) & (hh + dh < ho) &
                  (ww + dw >= 0) & (ww + dw < wo))
            masks.append(ok.astype(np.float32))
    return np.stack(masks, axis=0)[..., None]            # (9, M, 1)


def bottleneck_forward(rows, n, h, w, p):
    """rows: (N*H*W, Cin) NHWC-rows. Returns (rows_out, h_out, w_out)."""
    stride = p['stride']
    cin = rows.shape[-1]
    if stride > 1:
        # stride_in_1x1=True: a strided 1x1 conv == spatial subsample + matmul.
        rows = rows.reshape(n, h, w, cin)[:, ::stride, ::stride, :]
        h, w = rows.shape[1], rows.shape[2]
        rows = rows.reshape(n * h * w, cin)
    m = h * w
    assert m % 8 == 0, "rows-per-image must be a multiple of 8 for TPU tiling"
    assert m > w + 1, "feature map too small for the shifted-matmul 3x3 conv"
    pad_off = ((w + 1 + 7) // 8) * 8                      # aligned pad rows

    cb = p['w1'].shape[-1]
    cout = p['w3'].shape[-1]
    has_down = 'wd' in p
    mask = jnp.asarray(_conv3x3_mask(h, w))

    args = [rows, p['w1'], p['b1'], p['w2'], p['b2'], mask, p['w3'], p['b3']]
    if has_down:
        args += [p['wd'], p['bd']]

    in_specs = [pl.BlockSpec((m, cin), lambda b: (b, 0))]
    in_specs += [_full_spec(a) for a in args[1:]]
    out_spec = pl.BlockSpec((m, cout), lambda b: (b, 0))

    flops = 2 * n * m * (cin * cb + 9 * cb * cb + cb * cout
                         + (cin * cout if has_down else 0))
    bytes_accessed = int(
        sum(int(np.prod(a.shape)) * a.dtype.itemsize for a in args)
        + n * m * cout * rows.dtype.itemsize)

    # VMEM budget: double-buffered blocks + headroom, capped so it is valid on
    # every generation (v7x has only 64 MiB physical VMEM per TensorCore).
    block_bytes = int(
        sum(int(np.prod(a.shape)) * a.dtype.itemsize for a in args[1:])
        + m * cin * rows.dtype.itemsize + m * cout * rows.dtype.itemsize
        + (m + 2 * pad_off) * cb * rows.dtype.itemsize)
    vmem_limit = int(min(max(4 * block_bytes, 16 << 20), 40 << 20))

    kernel = functools.partial(_bottleneck_kernel, ho=h, wo=w,
                               pad_off=pad_off, has_down=has_down)
    out = pl.pallas_call(
        kernel,
        out_shape=jax.ShapeDtypeStruct((n * m, cout), rows.dtype),
        grid=(n,),
        in_specs=in_specs,
        out_specs=out_spec,
        scratch_shapes=[pltpu.VMEM((m + 2 * pad_off, cb), rows.dtype)],
        compiler_params=pltpu.CompilerParams(
            dimension_semantics=("parallel",),
            vmem_limit_bytes=vmem_limit),
        cost_estimate=pl.CostEstimate(flops=flops, transcendentals=0,
                                      bytes_accessed=bytes_accessed),
    )(*args)
    return out, h, w


# ------------------------- deterministic parameters ------------------------ #

def _conv_weight(key, cout, cin, k):
    fan_in = cin * k * k
    return (jax.random.normal(key, (cout, cin, k, k)) / math.sqrt(fan_in)
            ).astype(jnp.float32)


def _frozen_bn_params(key, c):
    """FrozenBatchNorm2d folded into (scale, bias): y = x*scale + bias."""
    k1, k2, k3, k4 = jax.random.split(key, 4)
    weight = jax.random.uniform(k1, (c,), minval=0.5, maxval=1.5)
    bias = jax.random.normal(k2, (c,)) * 0.1
    mean = jax.random.normal(k3, (c,)) * 0.1
    var = jax.random.uniform(k4, (c,), minval=0.5, maxval=1.5)
    scale = weight / jnp.sqrt(var)
    fbias = bias - mean * scale
    return scale.astype(jnp.float32), fbias.astype(jnp.float32)


def init_bottleneck(key, in_c, bneck_c, out_c, stride, compute_dtype):
    ks = jax.random.split(key, 8)
    w1 = _conv_weight(ks[0], bneck_c, in_c, 1)
    s1, b1 = _frozen_bn_params(ks[1], bneck_c)
    w2 = _conv_weight(ks[2], bneck_c, bneck_c, 3)
    s2, b2 = _frozen_bn_params(ks[3], bneck_c)
    w3 = _conv_weight(ks[4], out_c, bneck_c, 1)
    s3, b3 = _frozen_bn_params(ks[5], out_c)

    p = {
        'stride': stride,
        # raw PyTorch-layout params kept only for the pure-JAX reference
        'raw': dict(w1=w1, bn1=(s1, b1), w2=w2, bn2=(s2, b2),
                    w3=w3, bn3=(s3, b3)),
        # pre-transposed, FrozenBN-folded matmul weights used by the kernel
        'w1': (jnp.transpose(w1[:, :, 0, 0]) * s1[None, :]).astype(compute_dtype),
        'b1': b1.reshape(1, -1).astype(jnp.float32),
        'w2': (jnp.transpose(w2, (2, 3, 1, 0)).reshape(9, bneck_c, bneck_c)
               * s2[None, None, :]).astype(compute_dtype),
        'b2': b2.reshape(1, -1).astype(jnp.float32),
        'w3': (jnp.transpose(w3[:, :, 0, 0]) * s3[None, :]).astype(compute_dtype),
        'b3': b3.reshape(1, -1).astype(jnp.float32),
    }
    if in_c != out_c:
        wd = _conv_weight(ks[6], out_c, in_c, 1)
        sd, bd = _frozen_bn_params(ks[7], out_c)
        p['raw'].update(wd=wd, bnd=(sd, bd))
        p['wd'] = (jnp.transpose(wd[:, :, 0, 0]) * sd[None, :]).astype(compute_dtype)
        p['bd'] = bd.reshape(1, -1).astype(jnp.float32)
    return p


# -------------------------------- ResNetHead ------------------------------- #

StageSpec = namedtuple('StageSpec', ['index', 'block_count'])


class ResNetHeadPallas:
    """Mirrors ResNetHead forward with BottleneckWithFixedBatchNorm blocks."""

    def __init__(self, key, stages, num_groups=1, width_per_group=64,
                 stride_in_1x1=True, stride_init=None, res2_out_channels=256,
                 compute_dtype=jnp.float32):
        assert stride_in_1x1 and num_groups == 1
        self.compute_dtype = compute_dtype
        factor = 2 ** (stages[0].index - 1)
        bneck_c = num_groups * width_per_group * factor
        out_c = res2_out_channels * factor
        in_c = out_c // 2
        self.stage_params = []
        stride = stride_init
        for stage in stages:
            if not stride:
                stride = int(stage.index > 1) + 1
            blocks, c_in, s = [], in_c, stride
            for _ in range(stage.block_count):
                # TODO(synk): nl_type='cgnlx' non-local block is only inserted
                # when block_count == 6; this configuration never reaches it.
                key, sub = jax.random.split(key)
                blocks.append(init_bottleneck(sub, c_in, bneck_c, out_c, s,
                                              compute_dtype))
                s, c_in = 1, out_c
            self.stage_params.append(blocks)
            stride = None

    def __call__(self, x_nchw):
        n, c, h, w = x_nchw.shape
        # NCHW -> NHWC rows ONCE at entry; rows layout is kept across blocks.
        rows = jnp.transpose(x_nchw, (0, 2, 3, 1)).reshape(n * h * w, c)
        rows = rows.astype(self.compute_dtype)
        for blocks in self.stage_params:
            for p in blocks:
                rows, h, w = bottleneck_forward(rows, n, h, w, p)
        cout = rows.shape[-1]
        out = rows.astype(jnp.float32).reshape(n, h, w, cout)
        return jnp.transpose(out, (0, 3, 1, 2))


# ---------------------------- pure-JAX reference --------------------------- #

def _conv_ref(x, w, stride=1, padding=0):
    return lax.conv_general_dilated(x, w, (stride, stride),
                                    [(padding, padding)] * 2,
                                    dimension_numbers=('NCHW', 'OIHW', 'NCHW'))


def _bn_ref(x, sb):
    s, b = sb
    return x * s[None, :, None, None] + b[None, :, None, None]


def bottleneck_ref(x, p):
    r, stride = p['raw'], p['stride']
    out = jax.nn.relu(_bn_ref(_conv_ref(x, r['w1'], stride=stride), r['bn1']))
    out = jax.nn.relu(_bn_ref(_conv_ref(out, r['w2'], padding=1), r['bn2']))
    out = _bn_ref(_conv_ref(out, r['w3']), r['bn3'])
    res = (_bn_ref(_conv_ref(x, r['wd'], stride=stride), r['bnd'])
           if 'wd' in r else x)
    return jax.nn.relu(out + res)


def head_ref(model, x):
    for blocks in model.stage_params:
        for p in blocks:
            x = bottleneck_ref(x, p)
    return x


# ------------------------------------ main --------------------------------- #

if __name__ == "__main__":
    key = jax.random.PRNGKey(0)
    k_param, k_x = jax.random.split(key)

    # index=4 -> factor 8: in_channels=64, bottleneck=32, out_channels=128,
    # first block stride=2.
    stages = [StageSpec(index=4, block_count=3)]
    model = ResNetHeadPallas(k_param, stages, num_groups=1, width_per_group=4,
                             stride_in_1x1=True, stride_init=None,
                             res2_out_channels=16,
                             compute_dtype=jnp.float32)
    # NOTE: pass compute_dtype=jnp.bfloat16 to run the bf16 MXU path on v6e/v7x
    # (f32 accumulation and f32 epilogue are kept inside the kernel).

    x = jax.random.normal(k_x, (2, 64, 8, 8), dtype=jnp.float32)  # NCHW

    fwd = jax.jit(lambda t: model(t))
    y = jax.block_until_ready(fwd(x))
    assert y.shape == (2, 128, 4, 4), y.shape

    y_ref = jax.block_until_ready(jax.jit(lambda t: head_ref(model, t))(x))
    np.testing.assert_allclose(np.asarray(y), np.asarray(y_ref),
                               rtol=1e-2, atol=1e-2)
    print("KERNEL_OK")
</pallas_src>

<mosaic_0001>
module attributes {stable_mosaic.version = 11 : i64} {
  func.func @_bottleneck_kernel(%arg0: i32, %arg1: memref<16x128xf32, #tpu.memory_space<vmem>>, %arg2: memref<128x32xf32, #tpu.memory_space<vmem>>, %arg3: memref<1x32xf32, #tpu.memory_space<vmem>>, %arg4: memref<9x32x32xf32, #tpu.memory_space<vmem>>, %arg5: memref<1x32xf32, #tpu.memory_space<vmem>>, %arg6: memref<9x16x1xf32, #tpu.memory_space<vmem>>, %arg7: memref<32x128xf32, #tpu.memory_space<vmem>>, %arg8: memref<1x128xf32, #tpu.memory_space<vmem>>, %arg9: memref<16x128xf32, #tpu.memory_space<vmem>>, %arg10: memref<32x32xf32, #tpu.memory_space<vmem>>) attributes {dimension_semantics = [#tpu.dimension_semantics<parallel>], iteration_bounds = array<i64: 2>, scalar_prefetch = 0 : i64, scratch_operands = 1 : i64, tpu.core_type = #tpu.core_type<tc>, window_params = [{transform_indices = @transform_0, window_bounds = array<i64: 16, 128>}, {pipeline_mode = #tpu.pipeline_mode<synchronous>, transform_indices = @transform_1, window_bounds = array<i64: 128, 32>}, {pipeline_mode = #tpu.pipeline_mode<synchronous>, transform_indices = @transform_2, window_bounds = array<i64: 1, 32>}, {pipeline_mode = #tpu.pipeline_mode<synchronous>, transform_indices = @transform_3, window_bounds = array<i64: 9, 32, 32>}, {pipeline_mode = #tpu.pipeline_mode<synchronous>, transform_indices = @transform_4, window_bounds = array<i64: 1, 32>}, {pipeline_mode = #tpu.pipeline_mode<synchronous>, transform_indices = @transform_5, window_bounds = array<i64: 9, 16, 1>}, {pipeline_mode = #tpu.pipeline_mode<synchronous>, transform_indices = @transform_6, window_bounds = array<i64: 32, 128>}, {pipeline_mode = #tpu.pipeline_mode<synchronous>, transform_indices = @transform_7, window_bounds = array<i64: 1, 128>}, {transform_indices = @transform_8, window_bounds = array<i64: 16, 128>}]} {
    %c0 = arith.constant 0 : index
    %c0_0 = arith.constant 0 : index
    %0 = vector.load %arg1[%c0, %c0_0] : memref<16x128xf32, #tpu.memory_space<vmem>>, vector<16x128xf32>
    %c0_1 = arith.constant 0 : index
    %c0_2 = arith.constant 0 : index
    %1 = vector.load %arg2[%c0_1, %c0_2] : memref<128x32xf32, #tpu.memory_space<vmem>>, vector<128x32xf32>
    %cst = arith.constant dense<0.000000e+00> : vector<16x32xf32>
    %2 = tpu.matmul %0, %1, %cst {dimension_numbers = #tpu.dot_dimension_numbers<[1], [0], [0], [1], [0, 0, 1, 1], [], []>} : vector<16x128xf32>, vector<128x32xf32>, vector<16x32xf32> -> vector<16x32xf32>
    %c0_3 = arith.constant 0 : index
    %c0_4 = arith.constant 0 : index
    %3 = vector.load %arg3[%c0_3, %c0_4] : memref<1x32xf32, #tpu.memory_space<vmem>>, vector<1x32xf32>
    %4 = vector.broadcast %3 : vector<1x32xf32> to vector<16x32xf32>
    %5 = arith.addf %2, %4 : vector<16x32xf32>
    %cst_5 = arith.constant 0.000000e+00 : f32
    %6 = vector.broadcast %cst_5 : f32 to vector<16x32xf32>
    %7 = arith.maximumf %5, %6 : vector<16x32xf32>
    %cst_6 = arith.constant 0.000000e+00 : f32
    %8 = vector.broadcast %cst_6 : f32 to vector<32x32xf32>
    %c0_7 = arith.constant 0 : index
    %c0_8 = arith.constant 0 : index
    %9 = vector.load %arg10[%c0_7, %c0_8] : memref<32x32xf32, #tpu.memory_space<vmem>>, vector<32x32xf32>
    tpu.vector_store %arg10[%c0_7, %c0_8], %8 {strides = array<i32>} : memref<32x32xf32, #tpu.memory_space<vmem>>, vector<32x32xf32>,
    %c8 = arith.constant 8 : index
    %c0_9 = arith.constant 0 : index
    %10 = vector.load %arg10[%c8, %c0_9] : memref<32x32xf32, #tpu.memory_space<vmem>>, vector<16x32xf32>
    tpu.vector_store %arg10[%c8, %c0_9], %7 {strides = array<i32>} : memref<32x32xf32, #tpu.memory_space<vmem>>, vector<16x32xf32>,
    %cst_10 = arith.constant 0.000000e+00 : f32
    %11 = vector.broadcast %cst_10 : f32 to vector<16x32xf32>
    %c3 = arith.constant 3 : index
    %c0_11 = arith.constant 0 : index
    %12 = vector.load %arg10[%c3, %c0_11] : memref<32x32xf32, #tpu.memory_space<vmem>>, vector<16x32xf32>
    %c0_12 = arith.constant 0 : index
    %c0_13 = arith.constant 0 : index
    %c0_14 = arith.constant 0 : index
    %13 = vector.load %arg4[%c0_12, %c0_13, %c0_14] : memref<9x32x32xf32, #tpu.memory_space<vmem>>, vector<1x32x32xf32>
    %14 = vector.shape_cast %13 : vector<1x32x32xf32> to vector<32x32xf32>
    %cst_15 = arith.constant dense<0.000000e+00> : vector<16x32xf32>
    %15 = tpu.matmul %12, %14, %cst_15 {dimension_numbers = #tpu.dot_dimension_numbers<[1], [0], [0], [1], [0, 0, 1, 1], [], []>} : vector<16x32xf32>, vector<32x32xf32>, vector<16x32xf32> -> vector<16x32xf32>
    %c0_16 = arith.constant 0 : index
    %c0_17 = arith.constant 0 : index
    %c0_18 = arith.constant 0 : index
    %16 = vector.load %arg6[%c0_16, %c0_17, %c0_18] : memref<9x16x1xf32, #tpu.memory_space<vmem>>, vector<1x16x1xf32>
    %17 = vector.shape_cast %16 : vector<1x16x1xf32> to vector<16x1xf32>
    %18 = vector.broadcast %17 : vector<16x1xf32> to vector<16x32xf32>
    %19 = arith.mulf %15, %18 : vector<16x32xf32>
    %20 = arith.addf %11, %19 : vector<16x32xf32>
    %c4 = arith.constant 4 : index
    %c0_19 = arith.constant 0 : index
    %21 = vector.load %arg10[%c4, %c0_19] : memref<32x32xf32, #tpu.memory_space<vmem>>, vector<16x32xf32>
    %c1 = arith.constant 1 : index
    %c0_20 = arith.constant 0 : index
    %c0_21 = arith.constant 0 : index
    %22 = vector.load %arg4[%c1, %c0_20, %c0_21] : memref<9x32x32xf32, #tpu.memory_space<vmem>>, vector<1x32x32xf32>
    %23 = vector.shape_cast %22 : vector<1x32x32xf32> to vector<32x32xf32>
    %cst_22 = arith.constant dense<0.000000e+00> : vector<16x32xf32>
    %24 = tpu.matmul %21, %23, %cst_22 {dimension_numbers = #tpu.dot_dimension_numbers<[1], [0], [0], [1], [0, 0, 1, 1], [], []>} : vector<16x32xf32>, vector<32x32xf32>, vector<16x32xf32> -> vector<16x32xf32>
    %25 = arith.addf %20, %24 : vector<16x32xf32>
    %c5 = arith.constant 5 : index
    %c0_23 = arith.constant 0 : index
    %26 = vector.load %arg10[%c5, %c0_23] : memref<32x32xf32, #tpu.memory_space<vmem>>, vector<16x32xf32>
    %c2 = arith.constant 2 : index
    %c0_24 = arith.constant 0 : index
    %c0_25 = arith.constant 0 : index
    %27 = vector.load %arg4[%c2, %c0_24, %c0_25] : memref<9x32x32xf32, #tpu.memory_space<vmem>>, vector<1x32x32xf32>
    %28 = vector.shape_cast %27 : vector<1x32x32xf32> to vector<32x32xf32>
    %cst_26 = arith.constant dense<0.000000e+00> : vector<16x32xf32>
    %29 = tpu.matmul %26, %28, %cst_26 {dimension_numbers = #tpu.dot_dimension_numbers<[1], [0], [0], [1], [0, 0, 1, 1], [], []>} : vector<16x32xf32>, vector<32x32xf32>, vector<16x32xf32> -> vector<16x32xf32>
    %c2_27 = arith.constant 2 : index
    %c0_28 = arith.constant 0 : index
    %c0_29 = arith.constant 0 : index
    %30 = vector.load %arg6[%c2_27, %c0_28, %c0_29] : memref<9x16x1xf32, #tpu.memory_space<vmem>>, vector<1x16x1xf32>
    %31 = vector.shape_cast %30 : vector<1x16x1xf32> to vector<16x1xf32>
    %32 = vector.broadcast %31 : vector<16x1xf32> to vector<16x32xf32>
    %33 = arith.mulf %29, %32 : vector<16x32xf32>
    %34 = arith.addf %25, %33 : vector<16x32xf32>
    %c7 = arith.constant 7 : index
    %c0_30 = arith.constant 0 : index
    %35 = vector.load %arg10[%c7, %c0_30] : memref<32x32xf32, #tpu.memory_space<vmem>>, vector<16x32xf32>
    %c3_31 = arith.constant 3 : index
    %c0_32 = arith.constant 0 : index
    %c0_33 = arith.constant 0 : index
    %36 = vector.load %arg4[%c3_31, %c0_32, %c0_33] : memref<9x32x32xf32, #tpu.memory_space<vmem>>, vector<1x32x32xf32>
    %37 = vector.shape_cast %36 : vector<1x32x32xf32> to vector<32x32xf32>
    %cst_34 = arith.constant dense<0.000000e+00> : vector<16x32xf32>
    %38 = tpu.matmul %35, %37, %cst_34 {dimension_numbers = #tpu.dot_dimension_numbers<[1], [0], [0], [1], [0, 0, 1, 1], [], []>} : vector<16x32xf32>, vector<32x32xf32>, vector<16x32xf32> -> vector<16x32xf32>
    %c3_35 = arith.constant 3 : index
    %c0_36 = arith.constant 0 : index
    %c0_37 = arith.constant 0 : index
    %39 = vector.load %arg6[%c3_35, %c0_36, %c0_37] : memref<9x16x1xf32, #tpu.memory_space<vmem>>, vector<1x16x1xf32>
    %40 = vector.shape_cast %39 : vector<1x16x1xf32> to vector<16x1xf32>
    %41 = vector.broadcast %40 : vector<16x1xf32> to vector<16x32xf32>
    %42 = arith.mulf %38, %41 : vector<16x32xf32>
    %43 = arith.addf %34, %42 : vector<16x32xf32>
    %c8_38 = arith.constant 8 : index
    %c0_39 = arith.constant 0 : index
    %44 = vector.load %arg10[%c8_38, %c0_39] : memref<32x32xf32, #tpu.memory_space<vmem>>, vector<16x32xf32>
    %c4_40 = arith.constant 4 : index
    %c0_41 = arith.constant 0 : index
    %c0_42 = arith.constant 0 : index
    %45 = vector.load %arg4[%c4_40, %c0_41, %c0_42] : memref<9x32x32xf32, #tpu.memory_space<vmem>>, vector<1x32x32xf32>
    %46 = vector.shape_cast %45 : vector<1x32x32xf32> to vector<32x32xf32>
    %cst_43 = arith.constant dense<0.000000e+00> : vector<16x32xf32>
    %47 = tpu.matmul %44, %46, %cst_43 {dimension_numbers = #tpu.dot_dimension_numbers<[1], [0], [0], [1], [0, 0, 1, 1], [], []>} : vector<16x32xf32>, vector<32x32xf32>, vector<16x32xf32> -> vector<16x32xf32>
    %48 = arith.addf %43, %47 : vector<16x32xf32>
    %c9 = arith.constant 9 : index
    %c0_44 = arith.constant 0 : index
    %49 = vector.load %arg10[%c9, %c0_44] : memref<32x32xf32, #tpu.memory_space<vmem>>, vector<16x32xf32>
    %c5_45 = arith.constant 5 : index
    %c0_46 = arith.constant 0 : index
    %c0_47 = arith.constant 0 : index
    %50 = vector.load %arg4[%c5_45, %c0_46, %c0_47] : memref<9x32x32xf32, #tpu.memory_space<vmem>>, vector<1x32x32xf32>
    %51 = vector.shape_cast %50 : vector<1x32x32xf32> to vector<32x32xf32>
    %cst_48 = arith.constant dense<0.000000e+00> : vector<16x32xf32>
    %52 = tpu.matmul %49, %51, %cst_48 {dimension_numbers = #tpu.dot_dimension_numbers<[1], [0], [0], [1], [0, 0, 1, 1], [], []>} : vector<16x32xf32>, vector<32x32xf32>, vector<16x32xf32> -> vector<16x32xf32>
    %c5_49 = arith.constant 5 : index
    %c0_50 = arith.constant 0 : index
    %c0_51 = arith.constant 0 : index
    %53 = vector.load %arg6[%c5_49, %c0_50, %c0_51] : memref<9x16x1xf32, #tpu.memory_space<vmem>>, vector<1x16x1xf32>
    %54 = vector.shape_cast %53 : vector<1x16x1xf32> to vector<16x1xf32>
    %55 = vector.broadcast %54 : vector<16x1xf32> to vector<16x32xf32>
    %56 = arith.mulf %52, %55 : vector<16x32xf32>
    %57 = arith.addf %48, %56 : vector<16x32xf32>
    %c11 = arith.constant 11 : index
    %c0_52 = arith.constant 0 : index
    %58 = vector.load %arg10[%c11, %c0_52] : memref<32x32xf32, #tpu.memory_space<vmem>>, vector<16x32xf32>
    %c6 = arith.constant 6 : index
    %c0_53 = arith.constant 0 : index
    %c0_54 = arith.constant 0 : index
    %59 = vector.load %arg4[%c6, %c0_53, %c0_54] : memref<9x32x32xf32, #tpu.memory_space<vmem>>, vector<1x32x32xf32>
    %60 = vector.shape_cast %59 : vector<1x32x32xf32> to vector<32x32xf32>
    %cst_55 = arith.constant dense<0.000000e+00> : vector<16x32xf32>
    %61 = tpu.matmul %58, %60, %cst_55 {dimension_numbers = #tpu.dot_dimension_numbers<[1], [0], [0], [1], [0, 0, 1, 1], [], []>} : vector<16x32xf32>, vector<32x32xf32>, vector<16x32xf32> -> vector<16x32xf32>
    %c6_56 = arith.constant 6 : index
    %c0_57 = arith.constant 0 : index
    %c0_58 = arith.constant 0 : index
    %62 = vector.load %arg6[%c6_56, %c0_57, %c0_58] : memref<9x16x1xf32, #tpu.memory_space<vmem>>, vector<1x16x1xf32>
    %63 = vector.shape_cast %62 : vector<1x16x1xf32> to vector<16x1xf32>
    %64 = vector.broadcast %63 : vector<16x1xf32> to vector<16x32xf32>
    %65 = arith.mulf %61, %64 : vector<16x32xf32>
    %66 = arith.addf %57, %65 : vector<16x32xf32>
    %c12 = arith.constant 12 : index
    %c0_59 = arith.constant 0 : index
    %67 = vector.load %arg10[%c12, %c0_59] : memref<32x32xf32, #tpu.memory_space<vmem>>, vector<16x32xf32>
    %c7_60 = arith.constant 7 : index
    %c0_61 = arith.constant 0 : index
    %c0_62 = arith.constant 0 : index
    %68 = vector.load %arg4[%c7_60, %c0_61, %c0_62] : memref<9x32x32xf32, #tpu.memory_space<vmem>>, vector<1x32x32xf32>
    %69 = vector.shape_cast %68 : vector<1x32x32xf32> to vector<32x32xf32>
    %cst_63 = arith.constant dense<0.000000e+00> : vector<16x32xf32>
    %70 = tpu.matmul %67, %69, %cst_63 {dimension_numbers = #tpu.dot_dimension_numbers<[1], [0], [0], [1], [0, 0, 1, 1], [], []>} : vector<16x32xf32>, vector<32x32xf32>, vector<16x32xf32> -> vector<16x32xf32>
    %71 = arith.addf %66, %70 : vector<16x32xf32>
    %c13 = arith.constant 13 : index
    %c0_64 = arith.constant 0 : index
    %72 = vector.load %arg10[%c13, %c0_64] : memref<32x32xf32, #tpu.memory_space<vmem>>, vector<16x32xf32>
    %c8_65 = arith.constant 8 : index
    %c0_66 = arith.constant 0 : index
    %c0_67 = arith.constant 0 : index
    %73 = vector.load %arg4[%c8_65, %c0_66, %c0_67] : memref<9x32x32xf32, #tpu.memory_space<vmem>>, vector<1x32x32xf32>
    %74 = vector.shape_cast %73 : vector<1x32x32xf32> to vector<32x32xf32>
    %cst_68 = arith.constant dense<0.000000e+00> : vector<16x32xf32>
    %75 = tpu.matmul %72, %74, %cst_68 {dimension_numbers = #tpu.dot_dimension_numbers<[1], [0], [0], [1], [0, 0, 1, 1], [], []>} : vector<16x32xf32>, vector<32x32xf32>, vector<16x32xf32> -> vector<16x32xf32>
    %c8_69 = arith.constant 8 : index
    %c0_70 = arith.constant 0 : index
    %c0_71 = arith.constant 0 : index
    %76 = vector.load %arg6[%c8_69, %c0_70, %c0_71] : memref<9x16x1xf32, #tpu.memory_space<vmem>>, vector<1x16x1xf32>
    %77 = vector.shape_cast %76 : vector<1x16x1xf32> to vector<16x1xf32>
    %78 = vector.broadcast %77 : vector<16x1xf32> to vector<16x32xf32>
    %79 = arith.mulf %75, %78 : vector<16x32xf32>
    %80 = arith.addf %71, %79 : vector<16x32xf32>
    %c0_72 = arith.constant 0 : index
    %c0_73 = arith.constant 0 : index
    %81 = vector.load %arg5[%c0_72, %c0_73] : memref<1x32xf32, #tpu.memory_space<vmem>>, vector<1x32xf32>
    %82 = vector.broadcast %81 : vector<1x32xf32> to vector<16x32xf32>
    %83 = arith.addf %80, %82 : vector<16x32xf32>
    %cst_74 = arith.constant 0.000000e+00 : f32
    %84 = vector.broadcast %cst_74 : f32 to vector<16x32xf32>
    %85 = arith.maximumf %83, %84 : vector<16x32xf32>
    %c0_75 = arith.constant 0 : index
    %c0_76 = arith.constant 0 : index
    %86 = vector.load %arg7[%c0_75, %c0_76] : memref<32x128xf32, #tpu.memory_space<vmem>>, vector<32x128xf32>
    %cst_77 = arith.constant dense<0.000000e+00> : vector<16x128xf32>
    %87 = tpu.matmul %85, %86, %cst_77 {dimension_numbers = #tpu.dot_dimension_numbers<[1], [0], [0], [1], [0, 0, 1, 1], [], []>} : vector<16x32xf32>, vector<32x128xf32>, vector<16x128xf32> -> vector<16x128xf32>
    %c0_78 = arith.constant 0 : index
    %c0_79 = arith.constant 0 : index
    %88 = vector.load %arg8[%c0_78, %c0_79] : memref<1x128xf32, #tpu.memory_space<vmem>>, vector<1x128xf32>
    %89 = vector.broadcast %88 : vector<1x128xf32> to vector<16x128xf32>
    %90 = arith.addf %87, %89 : vector<16x128xf32>
    %91 = arith.addf %90, %0 : vector<16x128xf32>
    %cst_80 = arith.constant 0.000000e+00 : f32
    %92 = vector.broadcast %cst_80 : f32 to vector<16x128xf32>
    %93 = arith.maximumf %91, %92 : vector<16x128xf32>
    %c0_81 = arith.constant 0 : index
    %c0_82 = arith.constant 0 : index
    %94 = vector.load %arg9[%c0_81, %c0_82] : memref<16x128xf32, #tpu.memory_space<vmem>>, vector<16x128xf32>
    tpu.vector_store %arg9[%c0_81, %c0_82], %93 {strides = array<i32>} : memref<16x128xf32, #tpu.memory_space<vmem>>, vector<16x128xf32>,
    return
  }
  func.func @transform_0(%arg0: i32) -> (i32, i32) {
    %c0_i32 = arith.constant 0 : i32
    %c0_i32_0 = arith.constant 0 : i32
    return %arg0, %c0_i32 : i32, i32
  }
  func.func @transform_1(%arg0: i32) -> (i32, i32) {
    %c0_i32 = arith.constant 0 : i32
    %c0_i32_0 = arith.constant 0 : i32
    %c0_i32_1 = arith.constant 0 : i32
    return %c0_i32, %c0_i32_0 : i32, i32
  }
  func.func @transform_2(%arg0: i32) -> (i32, i32) {
    %c0_i32 = arith.constant 0 : i32
    %c0_i32_0 = arith.constant 0 : i32
    %c0_i32_1 = arith.constant 0 : i32
    return %c0_i32, %c0_i32_0 : i32, i32
  }
  func.func @transform_3(%arg0: i32) -> (i32, i32, i32) {
    %c0_i32 = arith.constant 0 : i32
    %c0_i32_0 = arith.constant 0 : i32
    %c0_i32_1 = arith.constant 0 : i32
    %c0_i32_2 = arith.constant 0 : i32
    return %c0_i32, %c0_i32_0, %c0_i32_1 : i32, i32, i32
  }
  func.func @transform_4(%arg0: i32) -> (i32, i32) {
    %c0_i32 = arith.constant 0 : i32
    %c0_i32_0 = arith.constant 0 : i32
    %c0_i32_1 = arith.constant 0 : i32
    return %c0_i32, %c0_i32_0 : i32, i32
  }
  func.func @transform_5(%arg0: i32) -> (i32, i32, i32) {
    %c0_i32 = arith.constant 0 : i32
    %c0_i32_0 = arith.constant 0 : i32
    %c0_i32_1 = arith.constant 0 : i32
    %c0_i32_2 = arith.constant 0 : i32
    return %c0_i32, %c0_i32_0, %c0_i32_1 : i32, i32, i32
  }
  func.func @transform_6(%arg0: i32) -> (i32, i32) {
    %c0_i32 = arith.constant 0 : i32
    %c0_i32_0 = arith.constant 0 : i32
    %c0_i32_1 = arith.constant 0 : i32
    return %c0_i32, %c0_i32_0 : i32, i32
  }
  func.func @transform_7(%arg0: i32) -> (i32, i32) {
    %c0_i32 = arith.constant 0 : i32
    %c0_i32_0 = arith.constant 0 : i32
    %c0_i32_1 = arith.constant 0 : i32
    return %c0_i32, %c0_i32_0 : i32, i32
  }
  func.func @transform_8(%arg0: i32) -> (i32, i32) {
    %c0_i32 = arith.constant 0 : i32
    %c0_i32_0 = arith.constant 0 : i32
    return %arg0, %c0_i32 : i32, i32
  }
}

module attributes {stable_mosaic.version = 11 : i64} {
  func.func @_bottleneck_kernel(%arg0: i32, %arg1: memref<16x64xf32, #tpu.memory_space<vmem>>, %arg2: memref<64x32xf32, #tpu.memory_space<vmem>>, %arg3: memref<1x32xf32, #tpu.memory_space<vmem>>, %arg4: memref<9x32x32xf32, #tpu.memory_space<vmem>>, %arg5: memref<1x32xf32, #tpu.memory_space<vmem>>, %arg6: memref<9x16x1xf32, #tpu.memory_space<vmem>>, %arg7: memref<32x128xf32, #tpu.memory_space<vmem>>, %arg8: memref<1x128xf32, #tpu.memory_space<vmem>>, %arg9: memref<64x128xf32, #tpu.memory_space<vmem>>, %arg10: memref<1x128xf32, #tpu.memory_space<vmem>>, %arg11: memref<16x128xf32, #tpu.memory_space<vmem>>, %arg12: memref<32x32xf32, #tpu.memory_space<vmem>>) attributes {dimension_semantics = [#tpu.dimension_semantics<parallel>], iteration_bounds = array<i64: 2>, scalar_prefetch = 0 : i64, scratch_operands = 1 : i64, tpu.core_type = #tpu.core_type<tc>, window_params = [{transform_indices = @transform_0, window_bounds = array<i64: 16, 64>}, {pipeline_mode = #tpu.pipeline_mode<synchronous>, transform_indices = @transform_1, window_bounds = array<i64: 64, 32>}, {pipeline_mode = #tpu.pipeline_mode<synchronous>, transform_indices = @transform_2, window_bounds = array<i64: 1, 32>}, {pipeline_mode = #tpu.pipeline_mode<synchronous>, transform_indices = @transform_3, window_bounds = array<i64: 9, 32, 32>}, {pipeline_mode = #tpu.pipeline_mode<synchronous>, transform_indices = @transform_4, window_bounds = array<i64: 1, 32>}, {pipeline_mode = #tpu.pipeline_mode<synchronous>, transform_indices = @transform_5, window_bounds = array<i64: 9, 16, 1>}, {pipeline_mode = #tpu.pipeline_mode<synchronous>, transform_indices = @transform_6, window_bounds = array<i64: 32, 128>}, {pipeline_mode = #tpu.pipeline_mode<synchronous>, transform_indices = @transform_7, window_bounds = array<i64: 1, 128>}, {pipeline_mode = #tpu.pipeline_mode<synchronous>, transform_indices = @transform_8, window_bounds = array<i64: 64, 128>}, {pipeline_mode = #tpu.pipeline_mode<synchronous>, transform_indices = @transform_9, window_bounds = array<i64: 1, 128>}, {transform_indices = @transform_10, window_bounds = array<i64: 16, 128>}]} {
    %c0 = arith.constant 0 : index
    %c0_0 = arith.constant 0 : index
    %0 = vector.load %arg1[%c0, %c0_0] : memref<16x64xf32, #tpu.memory_space<vmem>>, vector<16x64xf32>
    %c0_1 = arith.constant 0 : index
    %c0_2 = arith.constant 0 : index
    %1 = vector.load %arg2[%c0_1, %c0_2] : memref<64x32xf32, #tpu.memory_space<vmem>>, vector<64x32xf32>
    %cst = arith.constant dense<0.000000e+00> : vector<16x32xf32>
    %2 = tpu.matmul %0, %1, %cst {dimension_numbers = #tpu.dot_dimension_numbers<[1], [0], [0], [1], [0, 0, 1, 1], [], []>} : vector<16x64xf32>, vector<64x32xf32>, vector<16x32xf32> -> vector<16x32xf32>
    %c0_3 = arith.constant 0 : index
    %c0_4 = arith.constant 0 : index
    %3 = vector.load %arg3[%c0_3, %c0_4] : memref<1x32xf32, #tpu.memory_space<vmem>>, vector<1x32xf32>
    %4 = vector.broadcast %3 : vector<1x32xf32> to vector<16x32xf32>
    %5 = arith.addf %2, %4 : vector<16x32xf32>
    %cst_5 = arith.constant 0.000000e+00 : f32
    %6 = vector.broadcast %cst_5 : f32 to vector<16x32xf32>
    %7 = arith.maximumf %5, %6 : vector<16x32xf32>
    %cst_6 = arith.constant 0.000000e+00 : f32
    %8 = vector.broadcast %cst_6 : f32 to vector<32x32xf32>
    %c0_7 = arith.constant 0 : index
    %c0_8 = arith.constant 0 : index
    %9 = vector.load %arg12[%c0_7, %c0_8] : memref<32x32xf32, #tpu.memory_space<vmem>>, vector<32x32xf32>
    tpu.vector_store %arg12[%c0_7, %c0_8], %8 {strides = array<i32>} : memref<32x32xf32, #tpu.memory_space<vmem>>, vector<32x32xf32>,
    %c8 = arith.constant 8 : index
    %c0_9 = arith.constant 0 : index
    %10 = vector.load %arg12[%c8, %c0_9] : memref<32x32xf32, #tpu.memory_space<vmem>>, vector<16x32xf32>
    tpu.vector_store %arg12[%c8, %c0_9], %7 {strides = array<i32>} : memref<32x32xf32, #tpu.memory_space<vmem>>, vector<16x32xf32>,
    %cst_10 = arith.constant 0.000000e+00 : f32
    %11 = vector.broadcast %cst_10 : f32 to vector<16x32xf32>
    %c3 = arith.constant 3 : index
    %c0_11 = arith.constant 0 : index
    %12 = vector.load %arg12[%c3, %c0_11] : memref<32x32xf32, #tpu.memory_space<vmem>>, vector<16x32xf32>
    %c0_12 = arith.constant 0 : index
    %c0_13 = arith.constant 0 : index
    %c0_14 = arith.constant 0 : index
    %13 = vector.load %arg4[%c0_12, %c0_13, %c0_14] : memref<9x32x32xf32, #tpu.memory_space<vmem>>, vector<1x32x32xf32>
    %14 = vector.shape_cast %13 : vector<1x32x32xf32> to vector<32x32xf32>
    %cst_15 = arith.constant dense<0.000000e+00> : vector<16x32xf32>
    %15 = tpu.matmul %12, %14, %cst_15 {dimension_numbers = #tpu.dot_dimension_numbers<[1], [0], [0], [1], [0, 0, 1, 1], [], []>} : vector<16x32xf32>, vector<32x32xf32>, vector<16x32xf32> -> vector<16x32xf32>
    %c0_16 = arith.constant 0 : index
    %c0_17 = arith.constant 0 : index
    %c0_18 = arith.constant 0 : index
    %16 = vector.load %arg6[%c0_16, %c0_17, %c0_18] : memref<9x16x1xf32, #tpu.memory_space<vmem>>, vector<1x16x1xf32>
    %17 = vector.shape_cast %16 : vector<1x16x1xf32> to vector<16x1xf32>
    %18 = vector.broadcast %17 : vector<16x1xf32> to vector<16x32xf32>
    %19 = arith.mulf %15, %18 : vector<16x32xf32>
    %20 = arith.addf %11, %19 : vector<16x32xf32>
    %c4 = arith.constant 4 : index
    %c0_19 = arith.constant 0 : index
    %21 = vector.load %arg12[%c4, %c0_19] : memref<32x32xf32, #tpu.memory_space<vmem>>, vector<16x32xf32>
    %c1 = arith.constant 1 : index
    %c0_20 = arith.constant 0 : index
    %c0_21 = arith.constant 0 : index
    %22 = vector.load %arg4[%c1, %c0_20, %c0_21] : memref<9x32x32xf32, #tpu.memory_space<vmem>>, vector<1x32x32xf32>
    %23 = vector.shape_cast %22 : vector<1x32x32xf32> to vector<32x32xf32>
    %cst_22 = arith.constant dense<0.000000e+00> : vector<16x32xf32>
    %24 = tpu.matmul %21, %23, %cst_22 {dimension_numbers = #tpu.dot_dimension_numbers<[1], [0], [0], [1], [0, 0, 1, 1], [], []>} : vector<16x32xf32>, vector<32x32xf32>, vector<16x32xf32> -> vector<16x32xf32>
    %25 = arith.addf %20, %24 : vector<16x32xf32>
    %c5 = arith.constant 5 : index
    %c0_23 = arith.constant 0 : index
    %26 = vector.load %arg12[%c5, %c0_23] : memref<32x32xf32, #tpu.memory_space<vmem>>, vector<16x32xf32>
    %c2 = arith.constant 2 : index
    %c0_24 = arith.constant 0 : index
    %c0_25 = arith.constant 0 : index
    %27 = vector.load %arg4[%c2, %c0_24, %c0_25] : memref<9x32x32xf32, #tpu.memory_space<vmem>>, vector<1x32x32xf32>
    %28 = vector.shape_cast %27 : vector<1x32x32xf32> to vector<32x32xf32>
    %cst_26 = arith.constant dense<0.000000e+00> : vector<16x32xf32>
    %29 = tpu.matmul %26, %28, %cst_26 {dimension_numbers = #tpu.dot_dimension_numbers<[1], [0], [0], [1], [0, 0, 1, 1], [], []>} : vector<16x32xf32>, vector<32x32xf32>, vector<16x32xf32> -> vector<16x32xf32>
    %c2_27 = arith.constant 2 : index
    %c0_28 = arith.constant 0 : index
    %c0_29 = arith.constant 0 : index
    %30 = vector.load %arg6[%c2_27, %c0_28, %c0_29] : memref<9x16x1xf32, #tpu.memory_space<vmem>>, vector<1x16x1xf32>
    %31 = vector.shape_cast %30 : vector<1x16x1xf32> to vector<16x1xf32>
    %32 = vector.broadcast %31 : vector<16x1xf32> to vector<16x32xf32>
    %33 = arith.mulf %29, %32 : vector<16x32xf32>
    %34 = arith.addf %25, %33 : vector<16x32xf32>
    %c7 = arith.constant 7 : index
    %c0_30 = arith.constant 0 : index
    %35 = vector.load %arg12[%c7, %c0_30] : memref<32x32xf32, #tpu.memory_space<vmem>>, vector<16x32xf32>
    %c3_31 = arith.constant 3 : index
    %c0_32 = arith.constant 0 : index
    %c0_33 = arith.constant 0 : index
    %36 = vector.load %arg4[%c3_31, %c0_32, %c0_33] : memref<9x32x32xf32, #tpu.memory_space<vmem>>, vector<1x32x32xf32>
    %37 = vector.shape_cast %36 : vector<1x32x32xf32> to vector<32x32xf32>
    %cst_34 = arith.constant dense<0.000000e+00> : vector<16x32xf32>
    %38 = tpu.matmul %35, %37, %cst_34 {dimension_numbers = #tpu.dot_dimension_numbers<[1], [0], [0], [1], [0, 0, 1, 1], [], []>} : vector<16x32xf32>, vector<32x32xf32>, vector<16x32xf32> -> vector<16x32xf32>
    %c3_35 = arith.constant 3 : index
    %c0_36 = arith.constant 0 : index
    %c0_37 = arith.constant 0 : index
    %39 = vector.load %arg6[%c3_35, %c0_36, %c0_37] : memref<9x16x1xf32, #tpu.memory_space<vmem>>, vector<1x16x1xf32>
    %40 = vector.shape_cast %39 : vector<1x16x1xf32> to vector<16x1xf32>
    %41 = vector.broadcast %40 : vector<16x1xf32> to vector<16x32xf32>
    %42 = arith.mulf %38, %41 : vector<16x32xf32>
    %43 = arith.addf %34, %42 : vector<16x32xf32>
    %c8_38 = arith.constant 8 : index
    %c0_39 = arith.constant 0 : index
    %44 = vector.load %arg12[%c8_38, %c0_39] : memref<32x32xf32, #tpu.memory_space<vmem>>, vector<16x32xf32>
    %c4_40 = arith.constant 4 : index
    %c0_41 = arith.constant 0 : index
    %c0_42 = arith.constant 0 : index
    %45 = vector.load %arg4[%c4_40, %c0_41, %c0_42] : memref<9x32x32xf32, #tpu.memory_space<vmem>>, vector<1x32x32xf32>
    %46 = vector.shape_cast %45 : vector<1x32x32xf32> to vector<32x32xf32>
    %cst_43 = arith.constant dense<0.000000e+00> : vector<16x32xf32>
    %47 = tpu.matmul %44, %46, %cst_43 {dimension_numbers = #tpu.dot_dimension_numbers<[1], [0], [0], [1], [0, 0, 1, 1], [], []>} : vector<16x32xf32>, vector<32x32xf32>, vector<16x32xf32> -> vector<16x32xf32>
    %48 = arith.addf %43, %47 : vector<16x32xf32>
    %c9 = arith.constant 9 : index
    %c0_44 = arith.constant 0 : index
    %49 = vector.load %arg12[%c9, %c0_44] : memref<32x32xf32, #tpu.memory_space<vmem>>, vector<16x32xf32>
    %c5_45 = arith.constant 5 : index
    %c0_46 = arith.constant 0 : index
    %c0_47 = arith.constant 0 : index
    %50 = vector.load %arg4[%c5_45, %c0_46, %c0_47] : memref<9x32x32xf32, #tpu.memory_space<vmem>>, vector<1x32x32xf32>
    %51 = vector.shape_cast %50 : vector<1x32x32xf32> to vector<32x32xf32>
    %cst_48 = arith.constant dense<0.000000e+00> : vector<16x32xf32>
    %52 = tpu.matmul %49, %51, %cst_48 {dimension_numbers = #tpu.dot_dimension_numbers<[1], [0], [0], [1], [0, 0, 1, 1], [], []>} : vector<16x32xf32>, vector<32x32xf32>, vector<16x32xf32> -> vector<16x32xf32>
    %c5_49 = arith.constant 5 : index
    %c0_50 = arith.constant 0 : index
    %c0_51 = arith.constant 0 : index
    %53 = vector.load %arg6[%c5_49, %c0_50, %c0_51] : memref<9x16x1xf32, #tpu.memory_space<vmem>>, vector<1x16x1xf32>
    %54 = vector.shape_cast %53 : vector<1x16x1xf32> to vector<16x1xf32>
    %55 = vector.broadcast %54 : vector<16x1xf32> to vector<16x32xf32>
    %56 = arith.mulf %52, %55 : vector<16x32xf32>
    %57 = arith.addf %48, %56 : vector<16x32xf32>
    %c11 = arith.constant 11 : index
    %c0_52 = arith.constant 0 : index
    %58 = vector.load %arg12[%c11, %c0_52] : memref<32x32xf32, #tpu.memory_space<vmem>>, vector<16x32xf32>
    %c6 = arith.constant 6 : index
    %c0_53 = arith.constant 0 : index
    %c0_54 = arith.constant 0 : index
    %59 = vector.load %arg4[%c6, %c0_53, %c0_54] : memref<9x32x32xf32, #tpu.memory_space<vmem>>, vector<1x32x32xf32>
    %60 = vector.shape_cast %59 : vector<1x32x32xf32> to vector<32x32xf32>
    %cst_55 = arith.constant dense<0.000000e+00> : vector<16x32xf32>
    %61 = tpu.matmul %58, %60, %cst_55 {dimension_numbers = #tpu.dot_dimension_numbers<[1], [0], [0], [1], [0, 0, 1, 1], [], []>} : vector<16x32xf32>, vector<32x32xf32>, vector<16x32xf32> -> vector<16x32xf32>
    %c6_56 = arith.constant 6 : index
    %c0_57 = arith.constant 0 : index
    %c0_58 = arith.constant 0 : index
    %62 = vector.load %arg6[%c6_56, %c0_57, %c0_58] : memref<9x16x1xf32, #tpu.memory_space<vmem>>, vector<1x16x1xf32>
    %63 = vector.shape_cast %62 : vector<1x16x1xf32> to vector<16x1xf32>
    %64 = vector.broadcast %63 : vector<16x1xf32> to vector<16x32xf32>
    %65 = arith.mulf %61, %64 : vector<16x32xf32>
    %66 = arith.addf %57, %65 : vector<16x32xf32>
    %c12 = arith.constant 12 : index
    %c0_59 = arith.constant 0 : index
    %67 = vector.load %arg12[%c12, %c0_59] : memref<32x32xf32, #tpu.memory_space<vmem>>, vector<16x32xf32>
    %c7_60 = arith.constant 7 : index
    %c0_61 = arith.constant 0 : index
    %c0_62 = arith.constant 0 : index
    %68 = vector.load %arg4[%c7_60, %c0_61, %c0_62] : memref<9x32x32xf32, #tpu.memory_space<vmem>>, vector<1x32x32xf32>
    %69 = vector.shape_cast %68 : vector<1x32x32xf32> to vector<32x32xf32>
    %cst_63 = arith.constant dense<0.000000e+00> : vector<16x32xf32>
    %70 = tpu.matmul %67, %69, %cst_63 {dimension_numbers = #tpu.dot_dimension_numbers<[1], [0], [0], [1], [0, 0, 1, 1], [], []>} : vector<16x32xf32>, vector<32x32xf32>, vector<16x32xf32> -> vector<16x32xf32>
    %71 = arith.addf %66, %70 : vector<16x32xf32>
    %c13 = arith.constant 13 : index
    %c0_64 = arith.constant 0 : index
    %72 = vector.load %arg12[%c13, %c0_64] : memref<32x32xf32, #tpu.memory_space<vmem>>, vector<16x32xf32>
    %c8_65 = arith.constant 8 : index
    %c0_66 = arith.constant 0 : index
    %c0_67 = arith.constant 0 : index
    %73 = vector.load %arg4[%c8_65, %c0_66, %c0_67] : memref<9x32x32xf32, #tpu.memory_space<vmem>>, vector<1x32x32xf32>
    %74 = vector.shape_cast %73 : vector<1x32x32xf32> to vector<32x32xf32>
    %cst_68 = arith.constant dense<0.000000e+00> : vector<16x32xf32>
    %75 = tpu.matmul %72, %74, %cst_68 {dimension_numbers = #tpu.dot_dimension_numbers<[1], [0], [0], [1], [0, 0, 1, 1], [], []>} : vector<16x32xf32>, vector<32x32xf32>, vector<16x32xf32> -> vector<16x32xf32>
    %c8_69 = arith.constant 8 : index
    %c0_70 = arith.constant 0 : index
    %c0_71 = arith.constant 0 : index
    %76 = vector.load %arg6[%c8_69, %c0_70, %c0_71] : memref<9x16x1xf32, #tpu.memory_space<vmem>>, vector<1x16x1xf32>
    %77 = vector.shape_cast %76 : vector<1x16x1xf32> to vector<16x1xf32>
    %78 = vector.broadcast %77 : vector<16x1xf32> to vector<16x32xf32>
    %79 = arith.mulf %75, %78 : vector<16x32xf32>
    %80 = arith.addf %71, %79 : vector<16x32xf32>
    %c0_72 = arith.constant 0 : index
    %c0_73 = arith.constant 0 : index
    %81 = vector.load %arg5[%c0_72, %c0_73] : memref<1x32xf32, #tpu.memory_space<vmem>>, vector<1x32xf32>
    %82 = vector.broadcast %81 : vector<1x32xf32> to vector<16x32xf32>
    %83 = arith.addf %80, %82 : vector<16x32xf32>
    %cst_74 = arith.constant 0.000000e+00 : f32
    %84 = vector.broadcast %cst_74 : f32 to vector<16x32xf32>
    %85 = arith.maximumf %83, %84 : vector<16x32xf32>
    %c0_75 = arith.constant 0 : index
    %c0_76 = arith.constant 0 : index
    %86 = vector.load %arg7[%c0_75, %c0_76] : memref<32x128xf32, #tpu.memory_space<vmem>>, vector<32x128xf32>
    %cst_77 = arith.constant dense<0.000000e+00> : vector<16x128xf32>
    %87 = tpu.matmul %85, %86, %cst_77 {dimension_numbers = #tpu.dot_dimension_numbers<[1], [0], [0], [1], [0, 0, 1, 1], [], []>} : vector<16x32xf32>, vector<32x128xf32>, vector<16x128xf32> -> vector<16x128xf32>
    %c0_78 = arith.constant 0 : index
    %c0_79 = arith.constant 0 : index
    %88 = vector.load %arg8[%c0_78, %c0_79] : memref<1x128xf32, #tpu.memory_space<vmem>>, vector<1x128xf32>
    %89 = vector.broadcast %88 : vector<1x128xf32> to vector<16x128xf32>
    %90 = arith.addf %87, %89 : vector<16x128xf32>
    %c0_80 = arith.constant 0 : index
    %c0_81 = arith.constant 0 : index
    %91 = vector.load %arg9[%c0_80, %c0_81] : memref<64x128xf32, #tpu.memory_space<vmem>>, vector<64x128xf32>
    %cst_82 = arith.constant dense<0.000000e+00> : vector<16x128xf32>
    %92 = tpu.matmul %0, %91, %cst_82 {dimension_numbers = #tpu.dot_dimension_numbers<[1], [0], [0], [1], [0, 0, 1, 1], [], []>} : vector<16x64xf32>, vector<64x128xf32>, vector<16x128xf32> -> vector<16x128xf32>
    %c0_83 = arith.constant 0 : index
    %c0_84 = arith.constant 0 : index
    %93 = vector.load %arg10[%c0_83, %c0_84] : memref<1x128xf32, #tpu.memory_space<vmem>>, vector<1x128xf32>
    %94 = vector.broadcast %93 : vector<1x128xf32> to vector<16x128xf32>
    %95 = arith.addf %92, %94 : vector<16x128xf32>
    %96 = arith.addf %90, %95 : vector<16x128xf32>
    %cst_85 = arith.constant 0.000000e+00 : f32
    %97 = vector.broadcast %cst_85 : f32 to vector<16x128xf32>
    %98 = arith.maximumf %96, %97 : vector<16x128xf32>
    %c0_86 = arith.constant 0 : index
    %c0_87 = arith.constant 0 : index
    %99 = vector.load %arg11[%c0_86, %c0_87] : memref<16x128xf32, #tpu.memory_space<vmem>>, vector<16x128xf32>
    tpu.vector_store %arg11[%c0_86, %c0_87], %98 {strides = array<i32>} : memref<16x128xf32, #tpu.memory_space<vmem>>, vector<16x128xf32>,
    return
  }
  func.func @transform_0(%arg0: i32) -> (i32, i32) {
    %c0_i32 = arith.constant 0 : i32
    %c0_i32_0 = arith.constant 0 : i32
    return %arg0, %c0_i32 : i32, i32
  }
  func.func @transform_1(%arg0: i32) -> (i32, i32) {
    %c0_i32 = arith.constant 0 : i32
    %c0_i32_0 = arith.constant 0 : i32
    %c0_i32_1 = arith.constant 0 : i32
    return %c0_i32, %c0_i32_0 : i32, i32
  }
  func.func @transform_2(%arg0: i32) -> (i32, i32) {
    %c0_i32 = arith.constant 0 : i32
    %c0_i32_0 = arith.constant 0 : i32
    %c0_i32_1 = arith.constant 0 : i32
    return %c0_i32, %c0_i32_0 : i32, i32
  }
  func.func @transform_3(%arg0: i32) -> (i32, i32, i32) {
    %c0_i32 = arith.constant 0 : i32
    %c0_i32_0 = arith.constant 0 : i32
    %c0_i32_1 = arith.constant 0 : i32
    %c0_i32_2 = arith.constant 0 : i32
    return %c0_i32, %c0_i32_0, %c0_i32_1 : i32, i32, i32
  }
  func.func @transform_4(%arg0: i32) -> (i32, i32) {
    %c0_i32 = arith.constant 0 : i32
    %c0_i32_0 = arith.constant 0 : i32
    %c0_i32_1 = arith.constant 0 : i32
    return %c0_i32, %c0_i32_0 : i32, i32
  }
  func.func @transform_5(%arg0: i32) -> (i32, i32, i32) {
    %c0_i32 = arith.constant 0 : i32
    %c0_i32_0 = arith.constant 0 : i32
    %c0_i32_1 = arith.constant 0 : i32
    %c0_i32_2 = arith.constant 0 : i32
    return %c0_i32, %c0_i32_0, %c0_i32_1 : i32, i32, i32
  }
  func.func @transform_6(%arg0: i32) -> (i32, i32) {
    %c0_i32 = arith.constant 0 : i32
    %c0_i32_0 = arith.constant 0 : i32
    %c0_i32_1 = arith.constant 0 : i32
    return %c0_i32, %c0_i32_0 : i32, i32
  }
  func.func @transform_7(%arg0: i32) -> (i32, i32) {
    %c0_i32 = arith.constant 0 : i32
    %c0_i32_0 = arith.constant 0 : i32
    %c0_i32_1 = arith.constant 0 : i32
    return %c0_i32, %c0_i32_0 : i32, i32
  }
  func.func @transform_8(%arg0: i32) -> (i32, i32) {
    %c0_i32 = arith.constant 0 : i32
    %c0_i32_0 = arith.constant 0 : i32
    %c0_i32_1 = arith.constant 0 : i32
    return %c0_i32, %c0_i32_0 : i32, i32
  }
  func.func @transform_9(%arg0: i32) -> (i32, i32) {
    %c0_i32 = arith.constant 0 : i32
    %c0_i32_0 = arith.constant 0 : i32
    %c0_i32_1 = arith.constant 0 : i32
    return %c0_i32, %c0_i32_0 : i32, i32
  }
  func.func @transform_10(%arg0: i32) -> (i32, i32) {
    %c0_i32 = arith.constant 0 : i32
    %c0_i32_0 = arith.constant 0 : i32
    return %arg0, %c0_i32 : i32, i32
  }
}

module attributes {stable_mosaic.version = 11 : i64} {
  func.func @_bottleneck_kernel(%arg0: i32, %arg1: memref<16x128xf32, #tpu.memory_space<vmem>>, %arg2: memref<128x32xf32, #tpu.memory_space<vmem>>, %arg3: memref<1x32xf32, #tpu.memory_space<vmem>>, %arg4: memref<9x32x32xf32, #tpu.memory_space<vmem>>, %arg5: memref<1x32xf32, #tpu.memory_space<vmem>>, %arg6: memref<9x16x1xf32, #tpu.memory_space<vmem>>, %arg7: memref<32x128xf32, #tpu.memory_space<vmem>>, %arg8: memref<1x128xf32, #tpu.memory_space<vmem>>, %arg9: memref<16x128xf32, #tpu.memory_space<vmem>>, %arg10: memref<32x32xf32, #tpu.memory_space<vmem>>) attributes {dimension_semantics = [#tpu.dimension_semantics<parallel>], iteration_bounds = array<i64: 2>, scalar_prefetch = 0 : i64, scratch_operands = 1 : i64, tpu.core_type = #tpu.core_type<tc>, window_params = [{transform_indices = @transform_0, window_bounds = array<i64: 16, 128>}, {pipeline_mode = #tpu.pipeline_mode<synchronous>, transform_indices = @transform_1, window_bounds = array<i64: 128, 32>}, {pipeline_mode = #tpu.pipeline_mode<synchronous>, transform_indices = @transform_2, window_bounds = array<i64: 1, 32>}, {pipeline_mode = #tpu.pipeline_mode<synchronous>, transform_indices = @transform_3, window_bounds = array<i64: 9, 32, 32>}, {pipeline_mode = #tpu.pipeline_mode<synchronous>, transform_indices = @transform_4, window_bounds = array<i64: 1, 32>}, {pipeline_mode = #tpu.pipeline_mode<synchronous>, transform_indices = @transform_5, window_bounds = array<i64: 9, 16, 1>}, {pipeline_mode = #tpu.pipeline_mode<synchronous>, transform_indices = @transform_6, window_bounds = array<i64: 32, 128>}, {pipeline_mode = #tpu.pipeline_mode<synchronous>, transform_indices = @transform_7, window_bounds = array<i64: 1, 128>}, {transform_indices = @transform_8, window_bounds = array<i64: 16, 128>}]} {
    %c0 = arith.constant 0 : index
    %c0_0 = arith.constant 0 : index
    %0 = vector.load %arg1[%c0, %c0_0] : memref<16x128xf32, #tpu.memory_space<vmem>>, vector<16x128xf32>
    %c0_1 = arith.constant 0 : index
    %c0_2 = arith.constant 0 : index
    %1 = vector.load %arg2[%c0_1, %c0_2] : memref<128x32xf32, #tpu.memory_space<vmem>>, vector<128x32xf32>
    %cst = arith.constant dense<0.000000e+00> : vector<16x32xf32>
    %2 = tpu.matmul %0, %1, %cst {dimension_numbers = #tpu.dot_dimension_numbers<[1], [0], [0], [1], [0, 0, 1, 1], [], []>} : vector<16x128xf32>, vector<128x32xf32>, vector<16x32xf32> -> vector<16x32xf32>
    %c0_3 = arith.constant 0 : index
    %c0_4 = arith.constant 0 : index
    %3 = vector.load %arg3[%c0_3, %c0_4] : memref<1x32xf32, #tpu.memory_space<vmem>>, vector<1x32xf32>
    %4 = vector.broadcast %3 : vector<1x32xf32> to vector<16x32xf32>
    %5 = arith.addf %2, %4 : vector<16x32xf32>
    %cst_5 = arith.constant 0.000000e+00 : f32
    %6 = vector.broadcast %cst_5 : f32 to vector<16x32xf32>
    %7 = arith.maximumf %5, %6 : vector<16x32xf32>
    %cst_6 = arith.constant 0.000000e+00 : f32
    %8 = vector.broadcast %cst_6 : f32 to vector<32x32xf32>
    %c0_7 = arith.constant 0 : index
    %c0_8 = arith.constant 0 : index
    %9 = vector.load %arg10[%c0_7, %c0_8] : memref<32x32xf32, #tpu.memory_space<vmem>>, vector<32x32xf32>
    tpu.vector_store %arg10[%c0_7, %c0_8], %8 {strides = array<i32>} : memref<32x32xf32, #tpu.memory_space<vmem>>, vector<32x32xf32>,
    %c8 = arith.constant 8 : index
    %c0_9 = arith.constant 0 : index
    %10 = vector.load %arg10[%c8, %c0_9] : memref<32x32xf32, #tpu.memory_space<vmem>>, vector<16x32xf32>
    tpu.vector_store %arg10[%c8, %c0_9], %7 {strides = array<i32>} : memref<32x32xf32, #tpu.memory_space<vmem>>, vector<16x32xf32>,
    %cst_10 = arith.constant 0.000000e+00 : f32
    %11 = vector.broadcast %cst_10 : f32 to vector<16x32xf32>
    %c3 = arith.constant 3 : index
    %c0_11 = arith.constant 0 : index
    %12 = vector.load %arg10[%c3, %c0_11] : memref<32x32xf32, #tpu.memory_space<vmem>>, vector<16x32xf32>
    %c0_12 = arith.constant 0 : index
    %c0_13 = arith.constant 0 : index
    %c0_14 = arith.constant 0 : index
    %13 = vector.load %arg4[%c0_12, %c0_13, %c0_14] : memref<9x32x32xf32, #tpu.memory_space<vmem>>, vector<1x32x32xf32>
    %14 = vector.shape_cast %13 : vector<1x32x32xf32> to vector<32x32xf32>
    %cst_15 = arith.constant dense<0.000000e+00> : vector<16x32xf32>
    %15 = tpu.matmul %12, %14, %cst_15 {dimension_numbers = #tpu.dot_dimension_numbers<[1], [0], [0], [1], [0, 0, 1, 1], [], []>} : vector<16x32xf32>, vector<32x32xf32>, vector<16x32xf32> -> vector<16x32xf32>
    %c0_16 = arith.constant 0 : index
    %c0_17 = arith.constant 0 : index
    %c0_18 = arith.constant 0 : index
    %16 = vector.load %arg6[%c0_16, %c0_17, %c0_18] : memref<9x16x1xf32, #tpu.memory_space<vmem>>, vector<1x16x1xf32>
    %17 = vector.shape_cast %16 : vector<1x16x1xf32> to vector<16x1xf32>
    %18 = vector.broadcast %17 : vector<16x1xf32> to vector<16x32xf32>
    %19 = arith.mulf %15, %18 : vector<16x32xf32>
    %20 = arith.addf %11, %19 : vector<16x32xf32>
    %c4 = arith.constant 4 : index
    %c0_19 = arith.constant 0 : index
    %21 = vector.load %arg10[%c4, %c0_19] : memref<32x32xf32, #tpu.memory_space<vmem>>, vector<16x32xf32>
    %c1 = arith.constant 1 : index
    %c0_20 = arith.constant 0 : index
    %c0_21 = arith.constant 0 : index
    %22 = vector.load %arg4[%c1, %c0_20, %c0_21] : memref<9x32x32xf32, #tpu.memory_space<vmem>>, vector<1x32x32xf32>
    %23 = vector.shape_cast %22 : vector<1x32x32xf32> to vector<32x32xf32>
    %cst_22 = arith.constant dense<0.000000e+00> : vector<16x32xf32>
    %24 = tpu.matmul %21, %23, %cst_22 {dimension_numbers = #tpu.dot_dimension_numbers<[1], [0], [0], [1], [0, 0, 1, 1], [], []>} : vector<16x32xf32>, vector<32x32xf32>, vector<16x32xf32> -> vector<16x32xf32>
    %25 = arith.addf %20, %24 : vector<16x32xf32>
    %c5 = arith.constant 5 : index
    %c0_23 = arith.constant 0 : index
    %26 = vector.load %arg10[%c5, %c0_23] : memref<32x32xf32, #tpu.memory_space<vmem>>, vector<16x32xf32>
    %c2 = arith.constant 2 : index
    %c0_24 = arith.constant 0 : index
    %c0_25 = arith.constant 0 : index
    %27 = vector.load %arg4[%c2, %c0_24, %c0_25] : memref<9x32x32xf32, #tpu.memory_space<vmem>>, vector<1x32x32xf32>
    %28 = vector.shape_cast %27 : vector<1x32x32xf32> to vector<32x32xf32>
    %cst_26 = arith.constant dense<0.000000e+00> : vector<16x32xf32>
    %29 = tpu.matmul %26, %28, %cst_26 {dimension_numbers = #tpu.dot_dimension_numbers<[1], [0], [0], [1], [0, 0, 1, 1], [], []>} : vector<16x32xf32>, vector<32x32xf32>, vector<16x32xf32> -> vector<16x32xf32>
    %c2_27 = arith.constant 2 : index
    %c0_28 = arith.constant 0 : index
    %c0_29 = arith.constant 0 : index
    %30 = vector.load %arg6[%c2_27, %c0_28, %c0_29] : memref<9x16x1xf32, #tpu.memory_space<vmem>>, vector<1x16x1xf32>
    %31 = vector.shape_cast %30 : vector<1x16x1xf32> to vector<16x1xf32>
    %32 = vector.broadcast %31 : vector<16x1xf32> to vector<16x32xf32>
    %33 = arith.mulf %29, %32 : vector<16x32xf32>
    %34 = arith.addf %25, %33 : vector<16x32xf32>
    %c7 = arith.constant 7 : index
    %c0_30 = arith.constant 0 : index
    %35 = vector.load %arg10[%c7, %c0_30] : memref<32x32xf32, #tpu.memory_space<vmem>>, vector<16x32xf32>
    %c3_31 = arith.constant 3 : index
    %c0_32 = arith.constant 0 : index
    %c0_33 = arith.constant 0 : index
    %36 = vector.load %arg4[%c3_31, %c0_32, %c0_33] : memref<9x32x32xf32, #tpu.memory_space<vmem>>, vector<1x32x32xf32>
    %37 = vector.shape_cast %36 : vector<1x32x32xf32> to vector<32x32xf32>
    %cst_34 = arith.constant dense<0.000000e+00> : vector<16x32xf32>
    %38 = tpu.matmul %35, %37, %cst_34 {dimension_numbers = #tpu.dot_dimension_numbers<[1], [0], [0], [1], [0, 0, 1, 1], [], []>} : vector<16x32xf32>, vector<32x32xf32>, vector<16x32xf32> -> vector<16x32xf32>
    %c3_35 = arith.constant 3 : index
    %c0_36 = arith.constant 0 : index
    %c0_37 = arith.constant 0 : index
    %39 = vector.load %arg6[%c3_35, %c0_36, %c0_37] : memref<9x16x1xf32, #tpu.memory_space<vmem>>, vector<1x16x1xf32>
    %40 = vector.shape_cast %39 : vector<1x16x1xf32> to vector<16x1xf32>
    %41 = vector.broadcast %40 : vector<16x1xf32> to vector<16x32xf32>
    %42 = arith.mulf %38, %41 : vector<16x32xf32>
    %43 = arith.addf %34, %42 : vector<16x32xf32>
    %c8_38 = arith.constant 8 : index
    %c0_39 = arith.constant 0 : index
    %44 = vector.load %arg10[%c8_38, %c0_39] : memref<32x32xf32, #tpu.memory_space<vmem>>, vector<16x32xf32>
    %c4_40 = arith.constant 4 : index
    %c0_41 = arith.constant 0 : index
    %c0_42 = arith.constant 0 : index
    %45 = vector.load %arg4[%c4_40, %c0_41, %c0_42] : memref<9x32x32xf32, #tpu.memory_space<vmem>>, vector<1x32x32xf32>
    %46 = vector.shape_cast %45 : vector<1x32x32xf32> to vector<32x32xf32>
    %cst_43 = arith.constant dense<0.000000e+00> : vector<16x32xf32>
    %47 = tpu.matmul %44, %46, %cst_43 {dimension_numbers = #tpu.dot_dimension_numbers<[1], [0], [0], [1], [0, 0, 1, 1], [], []>} : vector<16x32xf32>, vector<32x32xf32>, vector<16x32xf32> -> vector<16x32xf32>
    %48 = arith.addf %43, %47 : vector<16x32xf32>
    %c9 = arith.constant 9 : index
    %c0_44 = arith.constant 0 : index
    %49 = vector.load %arg10[%c9, %c0_44] : memref<32x32xf32, #tpu.memory_space<vmem>>, vector<16x32xf32>
    %c5_45 = arith.constant 5 : index
    %c0_46 = arith.constant 0 : index
    %c0_47 = arith.constant 0 : index
    %50 = vector.load %arg4[%c5_45, %c0_46, %c0_47] : memref<9x32x32xf32, #tpu.memory_space<vmem>>, vector<1x32x32xf32>
    %51 = vector.shape_cast %50 : vector<1x32x32xf32> to vector<32x32xf32>
    %cst_48 = arith.constant dense<0.000000e+00> : vector<16x32xf32>
    %52 = tpu.matmul %49, %51, %cst_48 {dimension_numbers = #tpu.dot_dimension_numbers<[1], [0], [0], [1], [0, 0, 1, 1], [], []>} : vector<16x32xf32>, vector<32x32xf32>, vector<16x32xf32> -> vector<16x32xf32>
    %c5_49 = arith.constant 5 : index
    %c0_50 = arith.constant 0 : index
    %c0_51 = arith.constant 0 : index
    %53 = vector.load %arg6[%c5_49, %c0_50, %c0_51] : memref<9x16x1xf32, #tpu.memory_space<vmem>>, vector<1x16x1xf32>
    %54 = vector.shape_cast %53 : vector<1x16x1xf32> to vector<16x1xf32>
    %55 = vector.broadcast %54 : vector<16x1xf32> to vector<16x32xf32>
    %56 = arith.mulf %52, %55 : vector<16x32xf32>
    %57 = arith.addf %48, %56 : vector<16x32xf32>
    %c11 = arith.constant 11 : index
    %c0_52 = arith.constant 0 : index
    %58 = vector.load %arg10[%c11, %c0_52] : memref<32x32xf32, #tpu.memory_space<vmem>>, vector<16x32xf32>
    %c6 = arith.constant 6 : index
    %c0_53 = arith.constant 0 : index
    %c0_54 = arith.constant 0 : index
    %59 = vector.load %arg4[%c6, %c0_53, %c0_54] : memref<9x32x32xf32, #tpu.memory_space<vmem>>, vector<1x32x32xf32>
    %60 = vector.shape_cast %59 : vector<1x32x32xf32> to vector<32x32xf32>
    %cst_55 = arith.constant dense<0.000000e+00> : vector<16x32xf32>
    %61 = tpu.matmul %58, %60, %cst_55 {dimension_numbers = #tpu.dot_dimension_numbers<[1], [0], [0], [1], [0, 0, 1, 1], [], []>} : vector<16x32xf32>, vector<32x32xf32>, vector<16x32xf32> -> vector<16x32xf32>
    %c6_56 = arith.constant 6 : index
    %c0_57 = arith.constant 0 : index
    %c0_58 = arith.constant 0 : index
    %62 = vector.load %arg6[%c6_56, %c0_57, %c0_58] : memref<9x16x1xf32, #tpu.memory_space<vmem>>, vector<1x16x1xf32>
    %63 = vector.shape_cast %62 : vector<1x16x1xf32> to vector<16x1xf32>
    %64 = vector.broadcast %63 : vector<16x1xf32> to vector<16x32xf32>
    %65 = arith.mulf %61, %64 : vector<16x32xf32>
    %66 = arith.addf %57, %65 : vector<16x32xf32>
    %c12 = arith.constant 12 : index
    %c0_59 = arith.constant 0 : index
    %67 = vector.load %arg10[%c12, %c0_59] : memref<32x32xf32, #tpu.memory_space<vmem>>, vector<16x32xf32>
    %c7_60 = arith.constant 7 : index
    %c0_61 = arith.constant 0 : index
    %c0_62 = arith.constant 0 : index
    %68 = vector.load %arg4[%c7_60, %c0_61, %c0_62] : memref<9x32x32xf32, #tpu.memory_space<vmem>>, vector<1x32x32xf32>
    %69 = vector.shape_cast %68 : vector<1x32x32xf32> to vector<32x32xf32>
    %cst_63 = arith.constant dense<0.000000e+00> : vector<16x32xf32>
    %70 = tpu.matmul %67, %69, %cst_63 {dimension_numbers = #tpu.dot_dimension_numbers<[1], [0], [0], [1], [0, 0, 1, 1], [], []>} : vector<16x32xf32>, vector<32x32xf32>, vector<16x32xf32> -> vector<16x32xf32>
    %71 = arith.addf %66, %70 : vector<16x32xf32>
    %c13 = arith.constant 13 : index
    %c0_64 = arith.constant 0 : index
    %72 = vector.load %arg10[%c13, %c0_64] : memref<32x32xf32, #tpu.memory_space<vmem>>, vector<16x32xf32>
    %c8_65 = arith.constant 8 : index
    %c0_66 = arith.constant 0 : index
    %c0_67 = arith.constant 0 : index
    %73 = vector.load %arg4[%c8_65, %c0_66, %c0_67] : memref<9x32x32xf32, #tpu.memory_space<vmem>>, vector<1x32x32xf32>
    %74 = vector.shape_cast %73 : vector<1x32x32xf32> to vector<32x32xf32>
    %cst_68 = arith.constant dense<0.000000e+00> : vector<16x32xf32>
    %75 = tpu.matmul %72, %74, %cst_68 {dimension_numbers = #tpu.dot_dimension_numbers<[1], [0], [0], [1], [0, 0, 1, 1], [], []>} : vector<16x32xf32>, vector<32x32xf32>, vector<16x32xf32> -> vector<16x32xf32>
    %c8_69 = arith.constant 8 : index
    %c0_70 = arith.constant 0 : index
    %c0_71 = arith.constant 0 : index
    %76 = vector.load %arg6[%c8_69, %c0_70, %c0_71] : memref<9x16x1xf32, #tpu.memory_space<vmem>>, vector<1x16x1xf32>
    %77 = vector.shape_cast %76 : vector<1x16x1xf32> to vector<16x1xf32>
    %78 = vector.broadcast %77 : vector<16x1xf32> to vector<16x32xf32>
    %79 = arith.mulf %75, %78 : vector<16x32xf32>
    %80 = arith.addf %71, %79 : vector<16x32xf32>
    %c0_72 = arith.constant 0 : index
    %c0_73 = arith.constant 0 : index
    %81 = vector.load %arg5[%c0_72, %c0_73] : memref<1x32xf32, #tpu.memory_space<vmem>>, vector<1x32xf32>
    %82 = vector.broadcast %81 : vector<1x32xf32> to vector<16x32xf32>
    %83 = arith.addf %80, %82 : vector<16x32xf32>
    %cst_74 = arith.constant 0.000000e+00 : f32
    %84 = vector.broadcast %cst_74 : f32 to vector<16x32xf32>
    %85 = arith.maximumf %83, %84 : vector<16x32xf32>
    %c0_75 = arith.constant 0 : index
    %c0_76 = arith.constant 0 : index
    %86 = vector.load %arg7[%c0_75, %c0_76] : memref<32x128xf32, #tpu.memory_space<vmem>>, vector<32x128xf32>
    %cst_77 = arith.constant dense<0.000000e+00> : vector<16x128xf32>
    %87 = tpu.matmul %85, %86, %cst_77 {dimension_numbers = #tpu.dot_dimension_numbers<[1], [0], [0], [1], [0, 0, 1, 1], [], []>} : vector<16x32xf32>, vector<32x128xf32>, vector<16x128xf32> -> vector<16x128xf32>
    %c0_78 = arith.constant 0 : index
    %c0_79 = arith.constant 0 : index
    %88 = vector.load %arg8[%c0_78, %c0_79] : memref<1x128xf32, #tpu.memory_space<vmem>>, vector<1x128xf32>
    %89 = vector.broadcast %88 : vector<1x128xf32> to vector<16x128xf32>
    %90 = arith.addf %87, %89 : vector<16x128xf32>
    %91 = arith.addf %90, %0 : vector<16x128xf32>
    %cst_80 = arith.constant 0.000000e+00 : f32
    %92 = vector.broadcast %cst_80 : f32 to vector<16x128xf32>
    %93 = arith.maximumf %91, %92 : vector<16x128xf32>
    %c0_81 = arith.constant 0 : index
    %c0_82 = arith.constant 0 : index
    %94 = vector.load %arg9[%c0_81, %c0_82] : memref<16x128xf32, #tpu.memory_space<vmem>>, vector<16x128xf32>
    tpu.vector_store %arg9[%c0_81, %c0_82], %93 {strides = array<i32>} : memref<16x128xf32, #tpu.memory_space<vmem>>, vector<16x128xf32>,
    return
  }
  func.func @transform_0(%arg0: i32) -> (i32, i32) {
    %c0_i32 = arith.constant 0 : i32
    %c0_i32_0 = arith.constant 0 : i32
    return %arg0, %c0_i32 : i32, i32
  }
  func.func @transform_1(%arg0: i32) -> (i32, i32) {
    %c0_i32 = arith.constant 0 : i32
    %c0_i32_0 = arith.constant 0 : i32
    %c0_i32_1 = arith.constant 0 : i32
    return %c0_i32, %c0_i32_0 : i32, i32
  }
  func.func @transform_2(%arg0: i32) -> (i32, i32) {
    %c0_i32 = arith.constant 0 : i32
    %c0_i32_0 = arith.constant 0 : i32
    %c0_i32_1 = arith.constant 0 : i32
    return %c0_i32, %c0_i32_0 : i32, i32
  }
  func.func @transform_3(%arg0: i32) -> (i32, i32, i32) {
    %c0_i32 = arith.constant 0 : i32
    %c0_i32_0 = arith.constant 0 : i32
    %c0_i32_1 = arith.constant 0 : i32
    %c0_i32_2 = arith.constant 0 : i32
    return %c0_i32, %c0_i32_0, %c0_i32_1 : i32, i32, i32
  }
  func.func @transform_4(%arg0: i32) -> (i32, i32) {
    %c0_i32 = arith.constant 0 : i32
    %c0_i32_0 = arith.constant 0 : i32
    %c0_i32_1 = arith.constant 0 : i32
    return %c0_i32, %c0_i32_0 : i32, i32
  }
  func.func @transform_5(%arg0: i32) -> (i32, i32, i32) {
    %c0_i32 = arith.constant 0 : i32
    %c0_i32_0 = arith.constant 0 : i32
    %c0_i32_1 = arith.constant 0 : i32
    %c0_i32_2 = arith.constant 0 : i32
    return %c0_i32, %c0_i32_0, %c0_i32_1 : i32, i32, i32
  }
  func.func @transform_6(%arg0: i32) -> (i32, i32) {
    %c0_i32 = arith.constant 0 : i32
    %c0_i32_0 = arith.constant 0 : i32
    %c0_i32_1 = arith.constant 0 : i32
    return %c0_i32, %c0_i32_0 : i32, i32
  }
  func.func @transform_7(%arg0: i32) -> (i32, i32) {
    %c0_i32 = arith.constant 0 : i32
    %c0_i32_0 = arith.constant 0 : i32
    %c0_i32_1 = arith.constant 0 : i32
    return %c0_i32, %c0_i32_0 : i32, i32
  }
  func.func @transform_8(%arg0: i32) -> (i32, i32) {
    %c0_i32 = arith.constant 0 : i32
    %c0_i32_0 = arith.constant 0 : i32
    return %arg0, %c0_i32 : i32, i32
  }
}

</mosaic_0001>

<bundles_post_ra>
// kernel: _lambda_.5
= control target key start
LH: loop header
LB: loop body
LE: loop exit
PB: predicated region body
PF: predicated region fallthrough
CT: control target
= control target key end

     0   :  { %13 = vsyncpa [#allocation4], 0  ;;  %s1608_s0 = inlined_call_operand.vmem [shape: f32[32,128], index: 0, kind: input, shape index: {}]   ;;  %s1609_s1 = inlined_call_operand.hbm [shape: f32[128,32], index: 1, kind: input, shape index: {}]   ;;  %s1610_s2 = inlined_call_operand.vmem [shape: f32[1,32], index: 2, kind: input, shape index: {}]   ;;  %s1611_s3 = inlined_call_operand.vmem [shape: f32[9,32,32], index: 3, kind: input, shape index: {}]   ;;  %s1612_s4 = inlined_call_operand.vmem [shape: f32[1,32], index: 4, kind: input, shape index: {}]   ;;  %s1613_s5 = inlined_call_operand.vmem [shape: f32[9,16,1], index: 5, kind: input, shape index: {}]   ;;  %s1614_s6 = inlined_call_operand.hbm [shape: f32[32,128], index: 6, kind: input, shape index: {}]   ;;  %s1615_s7 = inlined_call_operand.vmem [shape: f32[1,128], index: 7, kind: input, shape index: {}]   ;;  %s1616_s8 = inlined_call_operand.hbm [shape: f32[32,128], index: 8, kind: output, shape index: {}]  }
   0x1   :  { %14 = vsyncpa [#allocation7], 0 }
   0x2   :  { %15 = vsyncpa [#allocation5], 0 }
   0x3   :  { %17 = vsyncpa [#allocation5 + $0x1], 0  ;;  %s1312_s27 = smov 0   ;;  %s1314_s28 = smov 0  }
   0x4   :  { %s1316_s29 = smov 0   ;;  %s1318_s30 = smov 0  }
   0x5 LB: > { %s1333_s9 = sadd.s32 4294967295, %s1257_s30   ;;  %s976_s10 = sadd.s32 4294967294, %s1257_s30   ;;  %s1257_s30 = sphi %s1318_s30, %s1623_s30   ;;  %s1253_s29 = sphi %s1316_s29, %s1622_s29   ;;  %s1249_s28 = sphi %s1314_s28, %s1621_s28   ;;  %s1245_s27 = sphi %s1312_s27, %s1620_s27  }
   0x6   : > { %s1337_s11 = sadd.s32 1, %s1257_s30   ;;  %s203_s12 = sadd.s32 1, %s1253_s29 }
   0x7   : > { %s200_s13 = ssub.s32 %s1257_s30, %s1337_s11  ;;  %p213_p0 = scmp.ne.s32.totalorder %s1253_s29, %s1249_s28 }
   0x8   : > { %p201_p1 = scmp.eq.s32.totalorder %s200_s13, 0  ;;  %p214_p2 = scmp.eq.s32.totalorder %s1333_s9, 1 }
   0x9   : > { %p219_p3 = scmp.ne.s32.totalorder %s1249_s28, %s1245_s27  ;;  %p220_p4 = scmp.eq.s32.totalorder %s976_s10, 1 }
   0xa   : > { %s1348_s14 = scalar_select %p201_p1, %s1253_s29, %s203_s12  }
   0xb   : > { %p1350_p5 = por %p214_p2, %p213_p0  ;;  %p1354_p6 = por %p220_p4, %p219_p3 }
   0xc   : > { %p977_p7 = scmp.ge.s32.totalorder %s1257_s30, 1  ;;  %p227_p8 = scmp.lt.s32.totalorder %s1257_s30, 3 }
   0xd   : > { %p1076_p9 = scmp.eq.s32.totalorder %s1333_s9, 0  ;;  %s238_s20 = sshll.u32 %s1609_s1, 4  ;;  %s239_s20 = int_to_ptr.hbm [resolvable:$true] %s238_s20 }
   0xe   : > { %p1361_p10 = pnand %p977_p7, %p227_p8  ;;  %s1259_s21 = smov [#allocation3]  }
   0xf   : > { %s240_s22 = sshll.u32 %s1259_s21, 4  ;;  %s264_s25 = sshll.u32 %s1614_s6, 4  ;;  %s241_s22 = int_to_ptr.vmem [resolvable:$true] %s240_s22  ;;  %s265_s25 = int_to_ptr.hbm [resolvable:$true] %s264_s25 }
  0x10   : > { %p1065_p11 = pneg %p1361_p10  ;;  %s1260_s26 = smov 128  }
  0x11   : > { %s1261_s10 = smov 8   ;;  %s1262_s12 = smov [#allocation6]  }
  0x12   : > { %p1066_p12 = pnand %p1076_p9, %p1065_p11  ;;  %s266_s13 = sshll.u32 %s1262_s12, 4  ;;  %s267_s13 = int_to_ptr.vmem [resolvable:$true] %s266_s13 }
  0x13   : > { %294 = sbr.rel (%p1361_p10) target bundleno = 515 (0x203), region = 52 }
  0x14   : > { %1068 = dma.hbm_to_vmem [thread:$0]  (!%p1066_p12), %s239_s20, 2048, %s241_s22, [#allocation4], %s1260_s26, %s1260_s26, %s1261_s10  }
  0x15   : > { %1071 = dma.hbm_to_vmem [thread:$0]  (!%p1066_p12), %s265_s25, 512, %s267_s13, [#allocation7], %s1260_s26, %s1260_s26, %s1261_s10  }
  0x18   : > { %1232 = dma.done.wait (%p1076_p9), [#allocation4], 2048  }
  0x19   : > { %1234 = vsyncadd (%p1076_p9), [#allocation4], 4294965248 }
  0x1a   : > { %1236 = dma.done.wait (%p1076_p9), [#allocation7], 512  }
  0x1b   : > { %1238 = vsyncadd (%p1076_p9), [#allocation7], 4294966784  ;;  %v358_v0 = vld [vmem:[#allocation3 + $0x78] sm:$0xff]  ;;  %v357_v1 = vld [vmem:[#allocation3 + $0x70] sm:$0xff]  ;;  %s985_s17 = sshll.u32 %s1333_s9, 1  ;;  %vm388_vm0 = vcmask 261120  }
  0x1c   : > { %363 = vmatpush.msra.mxu0 %v358_v0  ;;  %v356_v2 = vld [vmem:[#allocation3 + $0x68] sm:$0xff]  ;;  %v355_v3 = vld [vmem:[#allocation3 + $0x60] sm:$0xff]  ;;  %v354_v4 = vld [vmem:[#allocation3 + $0x58] sm:$0xff]  ;;  %p335_p13 = scmp.lt.s32.totalorder %s985_s17, 3  ;;  %v1263_v18 = vmov 0.0   ;;  %v1264_v37 = vmov 0  }
  0x1d   : > { %v353_v5 = vld [vmem:[#allocation3 + $0x50] sm:$0xff]  ;;  %v352_v6 = vld [vmem:[#allocation3 + $0x48] sm:$0xff]  ;;  %v351_v7 = vld [vmem:[#allocation3 + $0x40] sm:$0xff]  ;;  %389 = vst.msk [vmem:[#allocation2] sm:$0xff] %vm388_vm0, %v1263_v18  ;;  %1121 = vset.pattern.permute.xlu0 %v1264_v37  ;;  %1122 = vset.pattern.permute.xlu1 %v1264_v37  ;;  %s331_s20 = sand.u32 1, %s1249_s28   ;;  %s1054_s22 = sshll.u32 %s1333_s9, 4 }
  0x1e   : > { %364 = vmatpush.msra.mxu0 %v357_v1  ;;  %v350_v8 = vld [vmem:[#allocation3 + $0x38] sm:$0xff]  ;;  %v349_v9 = vld [vmem:[#allocation3 + $0x30] sm:$0xff]  ;;  %v348_v10 = vld [vmem:[#allocation3 + $0x28] sm:$0xff]  ;;  %s1625_s17 = smov (!%p335_p13, %s985_s17), 3  ;;  %390 = vst.msk [vmem:[#allocation2 + $0x8] sm:$0xff] %vm388_vm0, %v1263_v18  ;;  %1123 = vset.pattern.permute.xlu2 %v1264_v37  ;;  %s888_s26 = scalar_lea.hbm %s1616_s8, %s1054_s22 }
  0x1f   : > { %v347_v11 = vld [vmem:[#allocation3 + $0x20] sm:$0xff]  ;;  %v346_v12 = vld [vmem:[#allocation3 + $0x18] sm:$0xff]  ;;  %s986_s18 = sshll.u32 %s1625_s17, 3  ;;  %v345_v13 = vld [vmem:[#allocation3 + $0x10] sm:$0xff]  ;;  %392 = vst.msk [vmem:[#allocation2 + $0x18] sm:$0xff] %vm388_vm0, %v1263_v18  ;;  %s891_s12 = sshll.u32 %s888_s26, 4  ;;  %s892_s12 = int_to_ptr.hbm [resolvable:$true] %s891_s12 }
  0x20   : > { %365 = vmatpush.msra.mxu0 %v356_v2  ;;  %v344_v14 = vld [vmem:[#allocation3 + $0x8] sm:$0xff]  ;;  %s338_s21 = scalar_lea.vmem %s1608_s0, %s986_s18  ;;  %v343_v15 = vld [vmem:[#allocation3] sm:$0xff]  ;;  %v400_v19 = vld [vmem:[%s1611_s3 + $0x18] sm:$0xff]  ;;  %391 = vst.msk [vmem:[#allocation2 + $0x10] sm:$0xff] %vm388_vm0, %v1263_v18  ;;  %s877_s13 = scalar_lea.sflag [#allocation5], %s331_s20 }
  0x21   : > { %v1389_v16 = vld [vmem:[%s338_s21] sm:$0xff]  ;;  %v1392_v17 = vld [vmem:[%s338_s21 + $0x8] sm:$0xff]  ;;  %v992_v20 = vld [vmem:[%s1611_s3 + $0x38] sm:$0xff]  ;;  %419 = vmatpush.msra.mxu1 %v400_v19  ;;  %s984_s21 = sshll.u32 %s331_s20, 4  ;;  %s1201_s9 = sshra.s32 %s892_s12, 4  ;;  %s1202_s9 = int_to_ptr.hbm [resolvable:$true] %s1201_s9 }
  0x22   : > { %366 = vmatpush.msra.mxu0 %v355_v3  ;;  %v998_v21 = vld [vmem:[%s1611_s3 + $0x58] sm:$0xff]  ;;  %471 = vmatpush.msra.mxu2 %v992_v20  ;;  %v399_v22 = vld [vmem:[%s1611_s3 + $0x10] sm:$0xff]  ;;  %v398_v25 = vld [vmem:[%s1611_s3 + $0x8] sm:$0xff]  ;;  %s333_s23 = scalar_lea.vmem [#allocation8], %s984_s21  ;;  %s1203_s17 = scalar_lea.hbm %s1202_s9, 16 }
  0x23   : > { %509 = vmatpush.msra.mxu3 %v998_v21  ;;  %v991_v23 = vld [vmem:[%s1611_s3 + $0x30] sm:$0xff]  ;;  %420 = vmatpush.msra.mxu1 %v399_v22  ;;  %v990_v26 = vld [vmem:[%s1611_s3 + $0x28] sm:$0xff]  ;;  %v397_v28 = vld [vmem:[%s1611_s3] sm:$0xff]  ;;  %s889_s10 = sshll.u32 %s333_s23, 4  ;;  %p1204_p0 = scmp.ne.s32.totalorder %s1202_s9, %s1203_s17  ;;  %s890_s10 = int_to_ptr.vmem [resolvable:$true] %s889_s10 }
  0x24   : > { %367 = vmatpush.msra.mxu0 %v354_v4  ;;  %v997_v24 = vld [vmem:[%s1611_s3 + $0x50] sm:$0xff]  ;;  %472 = vmatpush.msra.mxu2 %v991_v23  ;;  %v996_v27 = vld [vmem:[%s1611_s3 + $0x48] sm:$0xff]  ;;  %v989_v29 = vld [vmem:[%s1611_s3 + $0x20] sm:$0xff]  ;;  %s1207_s21 = scalar_lea.hbm %s1616_s8, 32  ;;  %p1208_p3 = scmp.lt.s32.totalorder %s1202_s9, %s1616_s8 }
  0x25   : > { %510 = vmatpush.msra.mxu3 %v997_v24  ;;  %421 = vmatpush.msra.mxu1 %v398_v25  ;;  %v995_v30 = vld [vmem:[%s1611_s3 + $0x40] sm:$0xff]  ;;  %v1014_v31 = vld [vmem:[%s1611_s3 + $0x98] sm:$0xff]  ;;  %v1013_v35 = vld [vmem:[%s1611_s3 + $0x90] sm:$0xff]  ;;  %p1205_p1 = pnand %p1204_p0, %p1350_p5  ;;  %p1209_p4 = scmp.lt.s32.totalorder %s1207_s21, %s1203_s17 }
  0x26   : > { %368 = vmatpush.msra.mxu0 %v353_v5  ;;  %473 = vmatpush.msra.mxu2 %v990_v26  ;;  %v1020_v32 = vld [vmem:[%s1611_s3 + $0xb8] sm:$0xff]  ;;  %v430_v34 = vld [vmem:[%s1613_s5] sm:$0xff]  ;;  %v1019_v36 = vld [vmem:[%s1611_s3 + $0xb0] sm:$0xff] }
  0x27   : > { %511 = vmatpush.msra.mxu3 %v996_v27  ;;  %422 = vmatpush.msra.mxu1 %v397_v28  ;;  %v1006_v33 = vld [vmem:[%s1611_s3 + $0x78] sm:$0xff]  ;;  %v1009_v38 = vld [vmem:[%s1613_s5 + $0x30] sm:$0xff]  ;;  %v1012_v40 = vld [vmem:[%s1611_s3 + $0x88] sm:$0xff]  ;;  %p1206_p2 = pneg %p1205_p1  ;;  %p1210_p7 = por %p1209_p4, %p1208_p3 }
  0x28   : > { %369 = vmatpush.msra.mxu0 %v352_v6  ;;  %474 = vmatpush.msra.mxu2 %v989_v29  ;;  %v1005_v39 = vld [vmem:[%s1611_s3 + $0x70] sm:$0xff]  ;;  %v1018_v41 = vld [vmem:[%s1611_s3 + $0xa8] sm:$0xff]  ;;  %v1001_v43 = vld [vmem:[%s1613_s5 + $0x20] sm:$0xff] }
  0x29   : > { %512 = vmatpush.msra.mxu3 %v995_v30  ;;  %562 = vmatpush.msrb.mxu1 %v1006_v33  ;;  %v1004_v42 = vld [vmem:[%s1611_s3 + $0x68] sm:$0xff]  ;;  %v1011_v44 = vld [vmem:[%s1611_s3 + $0x80] sm:$0xff]  ;;  %v1010_v51 = vld [vmem:[%s1613_s5 + $0x38] sm:$0xff]  ;;  %p1211_p8 = pnand %p1210_p7, %p1206_p2 }
  0x2a   : > { %370 = vmatpush.msra.mxu0 %v351_v7  ;;  %615 = vmatpush.msrb.mxu2 %v1014_v31  ;;  %v1017_v45 = vld [vmem:[%s1611_s3 + $0xa0] sm:$0xff]  ;;  %v431_v46 = vld [vmem:[%s1613_s5 + $0x8] sm:$0xff]  ;;  %v1024_v54 = vld [vmem:[%s1613_s5 + $0x58] sm:$0xff] }
  0x2b   : > { %653 = vmatpush.msrb.mxu3 %v1020_v32  ;;  %434 = vperm.xlu0 %1121, %v430_v34   ;;  %v1003_v47 = vld [vmem:[%s1611_s3 + $0x60] sm:$0xff]  ;;  %v1032_v56 = vld [vmem:[%s1613_s5 + $0x68] sm:$0xff]  ;;  %v1036_v59 = vld [vmem:[%s1611_s3 + $0xf8] sm:$0xff] }
  0x2c   : > { %371 = vmatpush.msra.mxu0 %v350_v8  ;;  %616 = vmatpush.msrb.mxu2 %v1013_v35  ;;  %v1124_v48 = vld [vmem:[%s1610_s2] ss:$0 sm:$0xff]  ;;  %v1042_v60 = vld [vmem:[%s1611_s3 + $0x118] sm:$0xff]  ;;  %v1035_v1 = vld [vmem:[%s1611_s3 + $0xf0] sm:$0xff] }
  0x2d   : > { %654 = vmatpush.msrb.mxu3 %v1019_v36  ;;  %578 = vperm.xlu1 %1122, %v1009_v38   ;;  %v1031_v49 = vld [vmem:[%s1613_s5 + $0x60] sm:$0xff]  ;;  %v1028_v61 = vld [vmem:[%s1611_s3 + $0xd8] sm:$0xff]  ;;  %v1041_v2 = vld [vmem:[%s1611_s3 + $0x110] sm:$0xff] }
  0x2e   : > { %372 = vmatpush.msra.mxu0 %v349_v9  ;;  %563 = vmatpush.msrb.mxu1 %v1005_v39  ;;  %v1027_v3 = vld [vmem:[%s1611_s3 + $0xd0] sm:$0xff]  ;;  %v1034_v5 = vld [vmem:[%s1611_s3 + $0xe8] sm:$0xff]  ;;  %v1033_v8 = vld [vmem:[%s1611_s3 + $0xe0] sm:$0xff] }
  0x2f   : > { %617 = vmatpush.msrb.mxu2 %v1012_v40  ;;  %655 = vmatpush.msrb.mxu3 %v1018_v41  ;;  %v1023_v4 = vld [vmem:[%s1613_s5 + $0x50] sm:$0xff]  ;;  %v1040_v6 = vld [vmem:[%s1611_s3 + $0x108] sm:$0xff]  ;;  %v1039_v9 = vld [vmem:[%s1611_s3 + $0x100] sm:$0xff] }
  0x30   : > { %373 = vmatpush.msra.mxu0 %v348_v10  ;;  %564 = vmatpush.msrb.mxu1 %v1004_v42  ;;  %v1026_v7 = vld [vmem:[%s1611_s3 + $0xc8] sm:$0xff]  ;;  %v1025_v10 = vld [vmem:[%s1611_s3 + $0xc0] sm:$0xff]  ;;  %v836_v29 = vld [vmem:[#allocation6 + $0x18] sm:$0xff] }
  0x31   : > { %618 = vmatpush.msrb.mxu2 %v1011_v44  ;;  %656 = vmatpush.msrb.mxu3 %v1017_v45  ;;  %v1045_v20 = vld [vmem:[%s1613_s5 + $0x80] sm:$0xff]  ;;  %v1046_v24 = vld [vmem:[%s1613_s5 + $0x88] sm:$0xff]  ;;  %v835_v30 = vld [vmem:[#allocation6 + $0x10] sm:$0xff] }
  0x32   : > { %374 = vmatpush.msra.mxu0 %v347_v11  ;;  %565 = vmatpush.msrb.mxu1 %v1003_v47  ;;  %v834_v37 = vld [vmem:[#allocation6 + $0x8] sm:$0xff]  ;;  %v833_v38 = vld [vmem:[#allocation6] sm:$0xff] }
  0x33   : > { %525 = vperm.xlu0 %1121, %v1001_v43   ;;  %669 = vperm.xlu2 %1123, %v1023_v4  }
  0x34   : > { %375 = vmatpush.msra.mxu0 %v346_v12 }
  0x35   : > { %439 = vperm.xlu1 %1122, %v431_v46  }
  0x36   : > { %376 = vmatpush.msra.mxu0 %v345_v13 }
  0x38   : > { %377 = vmatpush.msra.mxu0 %v344_v14  ;;  %v1002_v14 = vld [vmem:[%s1613_s5 + $0x28] sm:$0xff] }
  0x3a   : > { %378 = vmatpush.msra.mxu0 %v343_v15 }
  0x3b   : > { %379 = vmatmul.f32.vlgmr.msra.gmra.mxu0 %v1389_v16  ;;  %722 = vperm.xlu0 %1121, %v1031_v49  }
  0x3c   : > { %530 = vperm.xlu2 %1123, %v1002_v14   ;;  %859 = vmatpush.msrb.mxu0 %v836_v29 }
  0x3d   : > { %583 = vperm.xlu1 %1122, %v1010_v51  }
  0x3e   : > { %860 = vmatpush.msrb.mxu0 %v835_v30 }
  0x40   : > { %861 = vmatpush.msrb.mxu0 %v834_v37 }
  0x42   : > { %862 = vmatpush.msrb.mxu0 %v833_v38 }
  0x43   : > { %382 = vmatmul.f32.gmra.mxu0 %v1392_v17  ;;  %674 = vperm.xlu0 %1121, %v1024_v54  }
  0x44   : > { %813 = vperm.xlu2 %1123, %v1045_v20  }
  0x45   : > { %727 = vperm.xlu1 %1122, %v1032_v56  }
  0x4c   : > { %818 = vperm.xlu2 %1123, %v1046_v24  }
  0x8d   : > { %v670_v41 = vpop.permute.xlu2 %669 }
  0x96   : > { %v531_v51 = vpop.permute.xlu2 %530 }
  0x9d   : > { %v435_v33 = vpop.permute.xlu0 %434 }
  0x9e   : > { %v814_v4 = vpop.permute.xlu2 %813 }
  0x9f   : > { %v579_v35 = vpop.permute.xlu1 %578 }
  0xa5   : > { %v526_v42 = vpop.permute.xlu0 %525 }
  0xa7   : > { %v440_v43 = vpop.permute.xlu1 %439 }
  0xaf   : > { %v584_v56 = vpop.permute.xlu1 %583 }
  0xb8   : > { %v380_v50 = vpop.f32.mrf.mxu0 }
  0xb9   : > { %v381_v52 = vadd.f32 %v1124_v48, %v380_v50 }
  0xbb   : > { %v386_v53 = vmax.f32 %v381_v52, 0.0 }
  0xbd   : > { %393 = vst.msk [vmem:[#allocation2 + $0x8] sm:$0xff] %vm388_vm0, %v386_v53  ;;  %v723_v53 = vpop.permute.xlu0 %722 }
  0xc0   : > { %v383_v55 = vpop.f32.mrf.mxu0 }
  0xc1   : > { %v384_v57 = vadd.f32 %v1124_v48, %v383_v55 }
  0xc3   : > { %v387_v58 = vmax.f32 %v384_v57, 0.0 }
  0xc4   : > { %v395_v62 = vld [vmem:[#allocation2 + $0x3] sm:$0xff] }
  0xc5   : > { %v446_v63 = vld [vmem:[#allocation2 + $0x4] sm:$0xff]  ;;  %394 = vst.msk [vmem:[#allocation2 + $0x10] sm:$0xff] %vm388_vm0, %v387_v58  ;;  %987 = vmatmul.msk.f32.vlgmr.msra.gmra.mxu1 %vm388_vm0, %v395_v62 }
  0xc6   : > { %v484_v0 = vld [vmem:[#allocation2 + $0x5] sm:$0xff]  ;;  %993 = vmatmul.msk.f32.vlgmr.msra.gmra.mxu2 %vm388_vm0, %v446_v63  ;;  %706 = vmatpush.msra.mxu1 %v1028_v61 }
  0xc7   : > { %999 = vmatmul.msk.f32.vlgmr.msra.gmra.mxu3 %vm388_vm0, %v484_v0  ;;  %759 = vmatpush.msra.mxu2 %v1036_v59  ;;  %v537_v15 = vld [vmem:[#allocation2 + $0x7] sm:$0xff] }
  0xc8   : > { %797 = vmatpush.msra.mxu3 %v1042_v60  ;;  %707 = vmatpush.msra.mxu1 %v1027_v3  ;;  %v590_v18 = vld [vmem:[#allocation2 + $0x8] sm:$0xff] }
  0xc9   : > { %760 = vmatpush.msra.mxu2 %v1035_v1 }
  0xca   : > { %798 = vmatpush.msra.mxu3 %v1041_v2  ;;  %708 = vmatpush.msra.mxu1 %v1026_v7  ;;  %v675_v7 = vpop.permute.xlu0 %674 }
  0xcb   : > { %761 = vmatpush.msra.mxu2 %v1034_v5 }
  0xcc   : > { %799 = vmatpush.msra.mxu3 %v1040_v6  ;;  %v396_v11 = vld [vmem:[#allocation2 + $0xb] sm:$0xff]  ;;  %709 = vmatpush.msra.mxu1 %v1025_v10  ;;  %v682_v25 = vld [vmem:[#allocation2 + $0x13] sm:$0xff] }
  0xcd   : > { %v447_v12 = vld [vmem:[#allocation2 + $0xc] sm:$0xff]  ;;  %762 = vmatpush.msra.mxu2 %v1033_v8  ;;  %988 = vmatmul.msk.f32.gmra.mxu1 %vm388_vm0, %v396_v11  ;;  %v735_v26 = vld [vmem:[#allocation2 + $0x14] sm:$0xff] }
  0xce   : > { %v485_v13 = vld [vmem:[#allocation2 + $0xd] sm:$0xff]  ;;  %994 = vmatmul.msk.f32.gmra.mxu2 %vm388_vm0, %v447_v12  ;;  %800 = vmatpush.msra.mxu3 %v1039_v9  ;;  %v773_v27 = vld [vmem:[#allocation2 + $0x15] sm:$0xff] }
  0xcf   : > { %1000 = vmatmul.msk.f32.gmra.mxu3 %vm388_vm0, %v485_v13  ;;  %v628_v19 = vld [vmem:[#allocation2 + $0x9] sm:$0xff]  ;;  %v629_v23 = vld [vmem:[#allocation2 + $0x11] sm:$0xff] }
  0xd0   : > { %v538_v21 = vld [vmem:[#allocation2 + $0xf] sm:$0xff] }
  0xd1   : > { %v591_v22 = vld [vmem:[#allocation2 + $0x10] sm:$0xff] }
  0xd5   : > { %1007 = vmatmul.msk.f32.vlgmr.msrb.gmra.mxu1 %vm388_vm0, %v537_v15  ;;  %v1125_v15 = vld [vmem:[%s1612_s4] ss:$0 sm:$0xff] }
  0xd6   : > { %1015 = vmatmul.msk.f32.vlgmr.msrb.gmra.mxu2 %vm388_vm0, %v590_v18 }
  0xd7   : > { %1021 = vmatmul.msk.f32.vlgmr.msrb.gmra.mxu3 %vm388_vm0, %v628_v19 }
  0xdd   : > { %1008 = vmatmul.msk.f32.gmra.mxu1 %vm388_vm0, %v538_v21 }
  0xde   : > { %1016 = vmatmul.msk.f32.gmra.mxu2 %vm388_vm0, %v591_v22 }
  0xdf   : > { %1022 = vmatmul.msk.f32.gmra.mxu3 %vm388_vm0, %v629_v23 }
  0xe5   : > { %1029 = vmatmul.msk.f32.vlgmr.msra.gmra.mxu1 %vm388_vm0, %v396_v11 }
  0xe6   : > { %1037 = vmatmul.msk.f32.vlgmr.msra.gmra.mxu2 %vm388_vm0, %v447_v12 }
  0xe7   : > { %1043 = vmatmul.msk.f32.vlgmr.msra.gmra.mxu3 %vm388_vm0, %v485_v13  ;;  %v728_v13 = vpop.permute.xlu1 %727 }
  0xed   : > { %1030 = vmatmul.msk.f32.gmra.mxu1 %vm388_vm0, %v682_v25 }
  0xee   : > { %1038 = vmatmul.msk.f32.gmra.mxu2 %vm388_vm0, %v735_v26  ;;  %v819_v26 = vpop.permute.xlu2 %818 }
  0xef   : > { %1044 = vmatmul.msk.f32.gmra.mxu3 %vm388_vm0, %v773_v27 }
 0x142   : > { %v424_v28 = vpop.f32.mrf.mxu1 }
 0x143   : > { %v442_v44 = vmul.f32 %v435_v33, %v424_v28  ;;  %v1126_v33 = vld [vmem:[%s1615_s7] ss:$0 sm:$0xff] }
 0x149   : > { %v476_v31 = vpop.f32.mrf.mxu2 }
 0x14a   : > { %v514_v32 = vpop.f32.mrf.mxu3  ;;  %v427_v34 = vpop.f32.mrf.mxu1  ;;  %v482_v46 = vadd.f32 %v476_v31, %v442_v44 }
 0x14b   : > { %v533_v47 = vmul.f32 %v526_v42, %v514_v32  ;;  %v443_v54 = vmul.f32 %v440_v43, %v427_v34 }
 0x14d   : > { %v535_v52 = vadd.f32 %v533_v47, %v482_v46 }
 0x151   : > { %v479_v36 = vpop.f32.mrf.mxu2 }
 0x152   : > { %v517_v39 = vpop.f32.mrf.mxu3  ;;  %v567_v40 = vpop.f32.mrf.mxu1  ;;  %v483_v58 = vadd.f32 %v479_v36, %v443_v54 }
 0x153   : > { %v586_v50 = vmul.f32 %v579_v35, %v567_v40  ;;  %v534_v59 = vmul.f32 %v531_v51, %v517_v39 }
 0x155   : > { %v588_v55 = vadd.f32 %v586_v50, %v535_v52  ;;  %v536_v2 = vadd.f32 %v534_v59, %v483_v58 }
 0x159   : > { %v620_v45 = vpop.f32.mrf.mxu2 }
 0x15a   : > { %v658_v48 = vpop.f32.mrf.mxu3  ;;  %v570_v49 = vpop.f32.mrf.mxu1  ;;  %v626_v60 = vadd.f32 %v620_v45, %v588_v55 }
 0x15b   : > { %v677_v61 = vmul.f32 %v670_v41, %v658_v48  ;;  %v587_v0 = vmul.f32 %v584_v56, %v570_v49 }
 0x15d   : > { %v679_v3 = vadd.f32 %v677_v61, %v626_v60  ;;  %v589_v5 = vadd.f32 %v587_v0, %v536_v2 }
 0x161   : > { %v623_v57 = vpop.f32.mrf.mxu2 }
 0x162   : > { %v661_v62 = vpop.f32.mrf.mxu3  ;;  %v711_v63 = vpop.f32.mrf.mxu1  ;;  %v627_v9 = vadd.f32 %v623_v57, %v589_v5 }
 0x163   : > { %v730_v1 = vmul.f32 %v723_v53, %v711_v63  ;;  %v678_v10 = vmul.f32 %v675_v7, %v661_v62 }
 0x165   : > { %v732_v6 = vadd.f32 %v730_v1, %v679_v3  ;;  %v680_v21 = vadd.f32 %v678_v10, %v627_v9 }
 0x169   : > { %v764_v8 = vpop.f32.mrf.mxu2 }
 0x16a   : > { %v770_v11 = vadd.f32 %v764_v8, %v732_v6  ;;  %v802_v12 = vpop.f32.mrf.mxu3  ;;  %v714_v18 = vpop.f32.mrf.mxu1 }
 0x16b   : > { %v821_v14 = vmul.f32 %v814_v4, %v802_v12  ;;  %v731_v19 = vmul.f32 %v728_v13, %v714_v18 }
 0x16d   : > { %v823_v20 = vadd.f32 %v821_v14, %v770_v11  ;;  %v733_v23 = vadd.f32 %v731_v19, %v680_v21 }
 0x16f   : > { %v829_v22 = vadd.f32 %v1125_v15, %v823_v20 }
 0x171   : > { %v831_v24 = vmax.f32 %v829_v22, 0.0  ;;  %v767_v25 = vpop.f32.mrf.mxu2 }
 0x172   : > { %v771_v27 = vadd.f32 %v767_v25, %v733_v23  ;;  %v805_v28 = vpop.f32.mrf.mxu3 }
 0x173   : > { %v822_v29 = vmul.f32 %v819_v26, %v805_v28  ;;  %1047 = vmatmul.msk.f32.vlgmr.msrb.gmra.mxu0 %vm388_vm0, %v831_v24 }
 0x175   : > { %v824_v30 = vadd.f32 %v822_v29, %v771_v27 }
 0x177   : > { %v830_v31 = vadd.f32 %v1125_v15, %v824_v30 }
 0x179   : > { %v832_v32 = vmax.f32 %v830_v31, 0.0 }
 0x17b   : > { %1048 = vmatmul.msk.f32.gmra.mxu0 %vm388_vm0, %v832_v32 }
 0x1f0   : > { %v864_v34 = vpop.f32.mrf.mxu0 }
 0x1f1   : > { %v865_v35 = vadd.f32 %v1126_v33, %v864_v34 }
 0x1f3   : > { %v870_v36 = vadd.f32 %v865_v35, %v1389_v16 }
 0x1f5   : > { %v872_v37 = vmax.f32 %v870_v36, 0.0 }
 0x1f7   : > { %874 = vst [vmem:[%s333_s23] sm:$0xff] %v872_v37 }
 0x1f8   : > { %v867_v38 = vpop.f32.mrf.mxu0 }
 0x1f9   : > { %v868_v39 = vadd.f32 %v1126_v33, %v867_v38 }
 0x1fb   : > { %v871_v40 = vadd.f32 %v868_v39, %v1392_v17 }
 0x1fd   : > { %v873_v41 = vmax.f32 %v871_v40, 0.0 }
 0x1ff   : > { %875 = vst [vmem:[%s333_s23 + $0x8] sm:$0xff] %v873_v41 }
 0x200   : > { %1214 = shalt.err (!%p1211_p8)
}
 0x201   : > { %s1265_s20 = smov 128   ;;  %s1266_s23 = smov 8  }
 0x202   : > { %1063 = dma.vmem_to_hbm [thread:$0]  (%p1350_p5), %s890_s10, 256, %s892_s12, %s877_s13, %s1265_s20, %s1265_s20, %s1266_s23  }
 0x203 PF: > { %p1080_p9 = scmp.ge.s32.totalorder %s1257_s30, 2  ;;  %s906_s25 = sand.u32 1, %s1245_s27  }
 0x204   : > { %s907_s26 = scalar_lea.sflag [#allocation5], %s906_s25 }
 0x205   : > { %p1073_p10 = pnand %p1080_p9, %p1354_p6 }
 0x207   : > { %p1074_p11 = pneg %p1073_p10 }
 0x209   : > { %1240 = dma.done.wait (%p1074_p11), %s907_s26, 256  }
 0x20a   : > { %1242 = vsyncadd (%p1074_p11), %s907_s26, 4294967040  ;;  %p20_p12 = scmp.ge.s32.totalorder %s1337_s11, 4   ;;  %s1620_s27 = smov %s1249_s28 }
 0x20b   : > { %s1621_s28 = smov %s1253_s29  ;;  %s1622_s29 = smov %s1348_s14 }
 0x20c   : > { %s1623_s30 = smov %s1337_s11  ;;  %22 = sbr.rel (!%p20_p12) target bundleno = 5 (0x5), region = 109 }
 0x211   :  { %913 = vsyncpa [#allocation4], 1 }
 0x212   :  { %915 = vsyncpa [#allocation4 + $0x1], 1 }
 0x213   :  { %916 = vsyncpa [#allocation7], 1 }
 0x214   :  { %917 = vsyncpa [#allocation5], 1 }
 0x215   :  { %919 = vsyncpa [#allocation5 + $0x1], 1 }

// kernel: _lambda_.3
= control target key start
LH: loop header
LB: loop body
LE: loop exit
PB: predicated region body
PF: predicated region fallthrough
CT: control target
= control target key end

     0   :  { %15 = vsyncpa [#allocation4], 0  ;;  %s1554_s0 = inlined_call_operand.vmem [shape: f32[32,64], index: 0, kind: input, shape index: {}]   ;;  %s1555_s1 = inlined_call_operand.vmem [shape: f32[64,32], index: 1, kind: input, shape index: {}]   ;;  %s1556_s2 = inlined_call_operand.vmem [shape: f32[1,32], index: 2, kind: input, shape index: {}]   ;;  %s1557_s3 = inlined_call_operand.hbm [shape: f32[9,32,32], index: 3, kind: input, shape index: {}]   ;;  %s1558_s4 = inlined_call_operand.vmem [shape: f32[1,32], index: 4, kind: input, shape index: {}]   ;;  %s1559_s5 = inlined_call_operand.hbm [shape: f32[9,16,1], index: 5, kind: input, shape index: {}]   ;;  %s1560_s6 = inlined_call_operand.hbm [shape: f32[32,128], index: 6, kind: input, shape index: {}]   ;;  %s1561_s7 = inlined_call_operand.vmem [shape: f32[1,128], index: 7, kind: input, shape index: {}]   ;;  %s1562_s8 = inlined_call_operand.hbm [shape: f32[64,128], index: 8, kind: input, shape index: {}]   ;;  %s1563_s9 = inlined_call_operand.vmem [shape: f32[1,128], index: 9, kind: input, shape index: {}]   ;;  %s1564_s10 = inlined_call_operand.vmem [shape: f32[32,128], index: 10, kind: output, shape index: {}]  }
   0x1   :  { %16 = vsyncpa [#allocation6], 0 }
   0x2   :  { %17 = vsyncpa [#allocation9], 0  ;;  %s1402_s13 = smov 0  }
   0x3 LB: > { %s1096_s14 = sadd.s32 4294967295, %s1337_s13   ;;  %p1098_p0 = scmp.ge.s32.totalorder %s1337_s13, 1  ;;  %s1337_s13 = sphi %s1402_s13, %s23_s13  }
   0x4   : > { %p269_p1 = scmp.lt.s32.totalorder %s1337_s13, 3  ;;  %p1412_p2 = scmp.eq.s32.totalorder %s1096_s14, 0 }
   0x5   : > { %s303_s18 = sshll.u32 %s1559_s5, 4  ;;  %s286_s22 = sshll.u32 %s1557_s3, 4  ;;  %s304_s18 = int_to_ptr.hbm [resolvable:$true] %s303_s18  ;;  %s287_s22 = int_to_ptr.hbm [resolvable:$true] %s286_s22 }
   0x6   : > { %p1419_p3 = pnand %p1098_p0, %p269_p1  ;;  %s1339_s23 = smov [#allocation5]  }
   0x7   : > { %s305_s24 = sshll.u32 %s1339_s23, 4  ;;  %s1340_s26 = smov [#allocation3]   ;;  %s306_s24 = int_to_ptr.vmem [resolvable:$true] %s305_s24 }
   0x8   : > { %p1155_p4 = pneg %p1419_p3  ;;  %s288_s27 = sshll.u32 %s1340_s26, 4  ;;  %s289_s27 = int_to_ptr.vmem [resolvable:$true] %s288_s27 }
   0x9   : > { %s317_s30 = sshll.u32 %s1560_s6, 4  ;;  %s1341_s11 = smov 128   ;;  %s318_s30 = int_to_ptr.hbm [resolvable:$true] %s317_s30 }
   0xa   : > { %p1430_p5 = pnand %p1412_p2, %p1155_p4  ;;  %s1342_s12 = smov 8  }
   0xb   : > { %s1343_s16 = smov [#allocation7]   ;;  %s334_s23 = sshll.u32 %s1562_s8, 4  ;;  %s335_s23 = int_to_ptr.hbm [resolvable:$true] %s334_s23 }
   0xc   : > { %1161 = dma.hbm_to_vmem [thread:$0]  (!%p1430_p5), %s304_s18, 2304, %s306_s24, [#allocation6], %s1341_s11, %s1341_s11, %s1342_s12  }
   0xd   : > { %1158 = dma.hbm_to_vmem [thread:$0]  (!%p1430_p5), %s287_s22, 4608, %s289_s27, [#allocation4], %s1341_s11, %s1341_s11, %s1342_s12  }
   0xe   : > { %s319_s17 = sshll.u32 %s1343_s16, 4  ;;  %s1344_s26 = smov [#allocation8]   ;;  %s320_s17 = int_to_ptr.vmem [resolvable:$true] %s319_s17 }
   0xf   : > { %1164 = dma.hbm_to_vmem [thread:$0]  (!%p1430_p5), %s318_s30, 512, %s320_s17, [#allocation6], %s1341_s11, %s1341_s11, %s1342_s12  }
  0x10   : > { %s336_s28 = sshll.u32 %s1344_s26, 4  ;;  %364 = sbr.rel (%p1419_p3) target bundleno = 500 (0x1f4), region = 60  ;;  %s337_s28 = int_to_ptr.vmem [resolvable:$true] %s336_s28 }
  0x11   : > { %1167 = dma.hbm_to_vmem [thread:$0]  (!%p1430_p5), %s335_s23, 1024, %s337_s28, [#allocation9], %s1341_s11, %s1341_s11, %s1342_s12  }
  0x15   : > { %1324 = dma.done.wait (%p1412_p2), [#allocation4], 4608  }
  0x16   : > { %1326 = vsyncadd (%p1412_p2), [#allocation4], 4294962688 }
  0x17   : > { %1328 = dma.done.wait (%p1412_p2), [#allocation6], 2816  }
  0x18   : > { %1330 = vsyncadd (%p1412_p2), [#allocation6], 4294964480 }
  0x19   : > { %1332 = dma.done.wait (%p1412_p2), [#allocation9], 1024  }
  0x1a   : > { %1334 = vsyncadd (%p1412_p2), [#allocation9], 4294966272  ;;  %s1109_s18 = sshll.u32 %s1096_s14, 1  ;;  %v439_v0 = vld [vmem:[%s1555_s1 + $0x38] sm:$0xff]  ;;  %v438_v1 = vld [vmem:[%s1555_s1 + $0x30] sm:$0xff]  ;;  %vm444_vm0 = vcmask 523264  }
  0x1b   : > { %p419_p6 = scmp.lt.s32.totalorder %s1109_s18, 3  ;;  %459 = vmatpush.msra.mxu0 %v439_v0  ;;  %v437_v2 = vld [vmem:[%s1555_s1 + $0x28] sm:$0xff]  ;;  %v436_v3 = vld [vmem:[%s1555_s1 + $0x20] sm:$0xff]  ;;  %v435_v4 = vld [vmem:[%s1555_s1 + $0x18] sm:$0xff]  ;;  %vm476_vm1 = vcmask 261120   ;;  %v1345_v10 = vmov 0.0  }
  0x1c   : > { %v434_v5 = vld [vmem:[%s1555_s1 + $0x10] sm:$0xff]  ;;  %v433_v6 = vld [vmem:[%s1555_s1 + $0x8] sm:$0xff]  ;;  %v432_v7 = vld [vmem:[%s1555_s1] sm:$0xff]  ;;  %477 = vst.msk [vmem:[#allocation2] sm:$0xff] %vm476_vm1, %v1345_v10  ;;  %v1346_v29 = vmov 0  }
  0x1d   : > { %460 = vmatpush.msra.mxu0 %v438_v1  ;;  %s1569_s18 = smov (!%p419_p6, %s1109_s18), 3  ;;  %478 = vst.msk [vmem:[#allocation2 + $0x8] sm:$0xff] %vm476_vm1, %v1345_v10  ;;  %v488_v11 = vld [vmem:[#allocation3 + $0x18] sm:$0xff]  ;;  %v487_v14 = vld [vmem:[#allocation3 + $0x10] sm:$0xff]  ;;  %v486_v17 = vld [vmem:[#allocation3 + $0x8] sm:$0xff]  ;;  %1193 = vset.pattern.permute.xlu1 %v1346_v29 }
  0x1e   : > { %s1110_s12 = sshll.u32 %s1569_s18, 3  ;;  %v540_v12 = vld [vmem:[#allocation3 + $0x38] sm:$0xff]  ;;  %480 = vst.msk [vmem:[#allocation2 + $0x18] sm:$0xff] %vm476_vm1, %v1345_v10  ;;  %507 = vmatpush.msra.mxu1 %v488_v11  ;;  %v539_v15 = vld [vmem:[#allocation3 + $0x30] sm:$0xff]  ;;  %v538_v18 = vld [vmem:[#allocation3 + $0x28] sm:$0xff]  ;;  %1192 = vset.pattern.permute.xlu0 %v1346_v29 }
  0x1f   : > { %461 = vmatpush.msra.mxu0 %v437_v2  ;;  %s422_s28 = scalar_lea.vmem %s1554_s0, %s1110_s12  ;;  %v578_v13 = vld [vmem:[#allocation3 + $0x58] sm:$0xff]  ;;  %559 = vmatpush.msra.mxu2 %v540_v12  ;;  %479 = vst.msk [vmem:[#allocation2 + $0x10] sm:$0xff] %vm476_vm1, %v1345_v10  ;;  %v577_v16 = vld [vmem:[#allocation3 + $0x50] sm:$0xff]  ;;  %v576_v19 = vld [vmem:[#allocation3 + $0x48] sm:$0xff]  ;;  %s428_s20 = scalar_lea.vmem %s1564_s10, %s1110_s12 }
  0x20   : > { %v1496_v8 = vld [vmem:[%s422_s28] sm:$0xff]  ;;  %v1500_v9 = vld [vmem:[%s422_s28 + $0x8] sm:$0xff]  ;;  %597 = vmatpush.msra.mxu3 %v578_v13  ;;  %508 = vmatpush.msra.mxu1 %v487_v14  ;;  %v684_v23 = vld [vmem:[#allocation3 + $0x98] sm:$0xff] }
  0x21   : > { %462 = vmatpush.msra.mxu0 %v436_v3  ;;  %560 = vmatpush.msra.mxu2 %v539_v15  ;;  %v485_v20 = vld [vmem:[#allocation3] sm:$0xff]  ;;  %v775_v24 = vld [vmem:[#allocation3 + $0xd8] sm:$0xff]  ;;  %v662_v25 = vld [vmem:[#allocation5 + $0x30] sm:$0xff] }
  0x22   : > { %598 = vmatpush.msra.mxu3 %v577_v16  ;;  %509 = vmatpush.msra.mxu1 %v486_v17  ;;  %v537_v21 = vld [vmem:[#allocation3 + $0x20] sm:$0xff]  ;;  %v774_v27 = vld [vmem:[#allocation3 + $0xd0] sm:$0xff]  ;;  %v631_v30 = vld [vmem:[#allocation3 + $0x78] sm:$0xff] }
  0x23   : > { %463 = vmatpush.msra.mxu0 %v435_v4  ;;  %561 = vmatpush.msra.mxu2 %v538_v18  ;;  %v575_v22 = vld [vmem:[#allocation3 + $0x40] sm:$0xff]  ;;  %v683_v28 = vld [vmem:[#allocation3 + $0x90] sm:$0xff]  ;;  %v773_v31 = vld [vmem:[#allocation3 + $0xc8] sm:$0xff] }
  0x24   : > { %599 = vmatpush.msra.mxu3 %v576_v19  ;;  %510 = vmatpush.msra.mxu1 %v485_v20  ;;  %v518_v26 = vld [vmem:[#allocation5] sm:$0xff]  ;;  %v682_v33 = vld [vmem:[#allocation3 + $0x88] sm:$0xff]  ;;  %v722_v34 = vld [vmem:[#allocation3 + $0xb8] sm:$0xff] }
  0x25   : > { %464 = vmatpush.msra.mxu0 %v434_v5  ;;  %562 = vmatpush.msra.mxu2 %v537_v21  ;;  %v772_v32 = vld [vmem:[#allocation3 + $0xc0] sm:$0xff]  ;;  %v630_v35 = vld [vmem:[#allocation3 + $0x70] sm:$0xff]  ;;  %v519_v37 = vld [vmem:[#allocation5 + $0x8] sm:$0xff] }
  0x26   : > { %600 = vmatpush.msra.mxu3 %v575_v22  ;;  %666 = vperm.xlu1 %1193, %v662_v25   ;;  %v721_v36 = vld [vmem:[#allocation3 + $0xb0] sm:$0xff]  ;;  %v609_v38 = vld [vmem:[#allocation5 + $0x20] sm:$0xff]  ;;  %v629_v40 = vld [vmem:[#allocation3 + $0x68] sm:$0xff] }
  0x27   : > { %465 = vmatpush.msra.mxu0 %v433_v6  ;;  %703 = vmatpush.msrb.mxu2 %v684_v23  ;;  %v681_v39 = vld [vmem:[#allocation3 + $0x80] sm:$0xff]  ;;  %v720_v41 = vld [vmem:[#allocation3 + $0xa8] sm:$0xff]  ;;  %v663_v45 = vld [vmem:[#allocation5 + $0x38] sm:$0xff] }
  0x28   : > { %522 = vperm.xlu0 %1192, %v518_v26   ;;  %650 = vmatpush.msrb.mxu1 %v631_v30  ;;  %v628_v42 = vld [vmem:[#allocation3 + $0x60] sm:$0xff]  ;;  %v807_v50 = vld [vmem:[#allocation5 + $0x68] sm:$0xff]  ;;  %v754_v51 = vld [vmem:[#allocation5 + $0x58] sm:$0xff] }
  0x29   : > { %466 = vmatpush.msra.mxu0 %v432_v7  ;;  %704 = vmatpush.msrb.mxu2 %v683_v28  ;;  %v719_v43 = vld [vmem:[#allocation3 + $0xa0] sm:$0xff]  ;;  %v866_v55 = vld [vmem:[#allocation3 + $0x118] sm:$0xff]  ;;  %v865_v60 = vld [vmem:[#allocation3 + $0x110] sm:$0xff] }
  0x2a   : > { %1113 = vmatmul.msk.f32.vlgmr.msra.gmra.mxu0 %vm444_vm0, %v1496_v8  ;;  %1194 = vset.pattern.permute.xlu2 %v1346_v29  ;;  %v1195_v44 = vld [vmem:[%s1556_s2] ss:$0 sm:$0xff]  ;;  %v828_v56 = vld [vmem:[#allocation3 + $0xf8] sm:$0xff]  ;;  %v753_v61 = vld [vmem:[#allocation5 + $0x50] sm:$0xff] }
  0x2b   : > { %794 = vmatpush.msrb.mxu0 %v775_v24  ;;  %705 = vmatpush.msrb.mxu2 %v682_v33  ;;  %v806_v46 = vld [vmem:[#allocation5 + $0x60] sm:$0xff]  ;;  %v827_v62 = vld [vmem:[#allocation3 + $0xf0] sm:$0xff]  ;;  %v864_v63 = vld [vmem:[#allocation3 + $0x108] sm:$0xff] }
  0x2c   : > { %741 = vmatpush.msrb.mxu3 %v722_v34  ;;  %651 = vmatpush.msrb.mxu1 %v630_v35  ;;  %v826_v0 = vld [vmem:[#allocation3 + $0xe8] sm:$0xff]  ;;  %v863_v1 = vld [vmem:[#allocation3 + $0x100] sm:$0xff]  ;;  %v963_v30 = vld [vmem:[#allocation8 + $0x28] sm:$0xff] }
  0x2d   : > { %795 = vmatpush.msrb.mxu0 %v774_v27  ;;  %706 = vmatpush.msrb.mxu2 %v681_v39  ;;  %v825_v2 = vld [vmem:[#allocation3 + $0xe0] sm:$0xff]  ;;  %v610_v6 = vld [vmem:[#allocation5 + $0x28] sm:$0xff]  ;;  %v962_v33 = vld [vmem:[#allocation8 + $0x20] sm:$0xff] }
  0x2e   : > { %742 = vmatpush.msrb.mxu3 %v721_v36  ;;  %527 = vperm.xlu1 %1193, %v519_v37   ;;  %v897_v13 = vld [vmem:[#allocation5 + $0x80] sm:$0xff]  ;;  %v898_v17 = vld [vmem:[#allocation5 + $0x88] sm:$0xff] }
  0x2f   : > { %796 = vmatpush.msrb.mxu0 %v773_v31  ;;  %652 = vmatpush.msrb.mxu1 %v629_v40  ;;  %v924_v21 = vld [vmem:[#allocation7 + $0x18] sm:$0xff]  ;;  %v923_v22 = vld [vmem:[#allocation7 + $0x10] sm:$0xff]  ;;  %v922_v31 = vld [vmem:[#allocation7 + $0x8] sm:$0xff] }
  0x30   : > { %613 = vperm.xlu0 %1192, %v609_v38   ;;  %743 = vmatpush.msrb.mxu3 %v720_v41  ;;  %v965_v23 = vld [vmem:[#allocation8 + $0x38] sm:$0xff]  ;;  %v964_v29 = vld [vmem:[#allocation8 + $0x30] sm:$0xff]  ;;  %v959_v41 = vld [vmem:[#allocation8 + $0x8] sm:$0xff] }
  0x31   : > { %797 = vmatpush.msrb.mxu0 %v772_v32  ;;  %653 = vmatpush.msrb.mxu1 %v628_v42  ;;  %v921_v32 = vld [vmem:[#allocation7] sm:$0xff]  ;;  %v961_v35 = vld [vmem:[#allocation8 + $0x18] sm:$0xff]  ;;  %v960_v40 = vld [vmem:[#allocation8 + $0x10] sm:$0xff] }
  0x32   : > { %1114 = vmatmul.msk.f32.gmra.mxu0 %vm444_vm0, %v1500_v9  ;;  %744 = vmatpush.msrb.mxu3 %v719_v43 }
  0x33   : > { %757 = vperm.xlu2 %1194, %v753_v61   ;;  %978 = vmatpush.msra.mxu0 %v965_v23 }
  0x35   : > { %979 = vmatpush.msra.mxu0 %v964_v29 }
  0x36   : > { %671 = vperm.xlu1 %1193, %v663_v45  }
  0x37   : > { %980 = vmatpush.msra.mxu0 %v963_v30 }
  0x38   : > { %810 = vperm.xlu0 %1192, %v806_v46  }
  0x39   : > { %981 = vmatpush.msra.mxu0 %v962_v33  ;;  %v1197_v33 = vld [vmem:[%s1561_s7] ss:$0 sm:$0xff] }
  0x3b   : > { %618 = vperm.xlu2 %1194, %v610_v6   ;;  %982 = vmatpush.msra.mxu0 %v961_v35 }
  0x3d   : > { %983 = vmatpush.msra.mxu0 %v960_v40 }
  0x3e   : > { %815 = vperm.xlu1 %1193, %v807_v50  }
  0x3f   : > { %984 = vmatpush.msra.mxu0 %v959_v41 }
  0x40   : > { %762 = vperm.xlu0 %1192, %v754_v51  }
  0x43   : > { %901 = vperm.xlu2 %1194, %v897_v13  }
  0x4b   : > { %906 = vperm.xlu2 %1194, %v898_v17  }
  0x8d   : > { %v758_v36 = vpop.permute.xlu2 %757 }
  0x98   : > { %v667_v28 = vpop.permute.xlu1 %666 }
  0x9a   : > { %v523_v24 = vpop.permute.xlu0 %522 }
  0xa0   : > { %v528_v42 = vpop.permute.xlu1 %527 }
  0xa2   : > { %v614_v38 = vpop.permute.xlu0 %613 }
  0xa7   : > { %v468_v47 = vpop.f32.mrf.mxu0 }
  0xa8   : > { %v469_v48 = vadd.f32 %v1195_v44, %v468_v47 }
  0xaa   : > { %v474_v49 = vmax.f32 %v469_v48, 0.0 }
  0xac   : > { %481 = vst.msk [vmem:[#allocation2 + $0x8] sm:$0xff] %vm476_vm1, %v474_v49 }
  0xaf   : > { %v471_v52 = vpop.f32.mrf.mxu0 }
  0xb0   : > { %v472_v53 = vadd.f32 %v1195_v44, %v471_v52  ;;  %v958_v44 = vld [vmem:[#allocation8] sm:$0xff]  ;;  %v619_v52 = vpop.permute.xlu2 %618 }
  0xb1   : > { %985 = vmatpush.msra.mxu0 %v958_v44 }
  0xb2   : > { %v475_v54 = vmax.f32 %v472_v53, 0.0  ;;  %v811_v53 = vpop.permute.xlu0 %810 }
  0xb3   : > { %v483_v57 = vld [vmem:[#allocation2 + $0x3] sm:$0xff] }
  0xb4   : > { %v534_v58 = vld [vmem:[#allocation2 + $0x4] sm:$0xff]  ;;  %482 = vst.msk [vmem:[#allocation2 + $0x10] sm:$0xff] %vm476_vm1, %v475_v54  ;;  %1115 = vmatmul.msk.f32.vlgmr.msra.gmra.mxu1 %vm476_vm1, %v483_v57 }
  0xb5   : > { %v572_v59 = vld [vmem:[#allocation2 + $0x5] sm:$0xff]  ;;  %1117 = vmatmul.msk.f32.vlgmr.msra.gmra.mxu2 %vm476_vm1, %v534_v58  ;;  %847 = vmatpush.msra.mxu1 %v828_v56  ;;  %v672_v56 = vpop.permute.xlu1 %671 }
  0xb6   : > { %1119 = vmatmul.msk.f32.vlgmr.msra.gmra.mxu3 %vm476_vm1, %v572_v59  ;;  %885 = vmatpush.msra.mxu2 %v866_v55  ;;  %v625_v7 = vld [vmem:[#allocation2 + $0x7] sm:$0xff] }
  0xb7   : > { %848 = vmatpush.msra.mxu1 %v827_v62  ;;  %v678_v10 = vld [vmem:[#allocation2 + $0x8] sm:$0xff]  ;;  %947 = vmatpush.msra.mxu3 %v924_v21 }
  0xb8   : > { %886 = vmatpush.msra.mxu2 %v865_v60 }
  0xb9   : > { %849 = vmatpush.msra.mxu1 %v826_v0  ;;  %948 = vmatpush.msra.mxu3 %v923_v22 }
  0xba   : > { %887 = vmatpush.msra.mxu2 %v864_v63  ;;  %v763_v6 = vpop.permute.xlu0 %762 }
  0xbb   : > { %v484_v3 = vld [vmem:[#allocation2 + $0xb] sm:$0xff]  ;;  %850 = vmatpush.msra.mxu1 %v825_v2  ;;  %v770_v12 = vld [vmem:[#allocation2 + $0x13] sm:$0xff]  ;;  %949 = vmatpush.msra.mxu3 %v922_v31 }
  0xbc   : > { %v535_v4 = vld [vmem:[#allocation2 + $0xc] sm:$0xff]  ;;  %888 = vmatpush.msra.mxu2 %v863_v1  ;;  %1116 = vmatmul.msk.f32.gmra.mxu1 %vm476_vm1, %v484_v3  ;;  %v823_v18 = vld [vmem:[#allocation2 + $0x14] sm:$0xff] }
  0xbd   : > { %v573_v5 = vld [vmem:[#allocation2 + $0xd] sm:$0xff]  ;;  %1118 = vmatmul.msk.f32.gmra.mxu2 %vm476_vm1, %v535_v4  ;;  %1127 = vmatmul.msk.f32.vlgmr.msrb.gmra.mxu0 %vm476_vm1, %v484_v3  ;;  %v861_v19 = vld [vmem:[#allocation2 + $0x15] sm:$0xff] }
  0xbe   : > { %1120 = vmatmul.msk.f32.gmra.mxu3 %vm476_vm1, %v573_v5  ;;  %v716_v11 = vld [vmem:[#allocation2 + $0x9] sm:$0xff]  ;;  %v717_v16 = vld [vmem:[#allocation2 + $0x11] sm:$0xff] }
  0xbf   : > { %v626_v14 = vld [vmem:[#allocation2 + $0xf] sm:$0xff]  ;;  %950 = vmatpush.msra.mxu3 %v921_v32  ;;  %v1198_v32 = vld [vmem:[%s1563_s9] ss:$0 sm:$0xff] }
  0xc0   : > { %v679_v15 = vld [vmem:[#allocation2 + $0x10] sm:$0xff] }
  0xc4   : > { %1121 = vmatmul.msk.f32.vlgmr.msrb.gmra.mxu1 %vm476_vm1, %v625_v7 }
  0xc5   : > { %1123 = vmatmul.msk.f32.vlgmr.msrb.gmra.mxu2 %vm476_vm1, %v678_v10  ;;  %1128 = vmatmul.msk.f32.gmra.mxu0 %vm476_vm1, %v770_v12 }
  0xc6   : > { %1125 = vmatmul.msk.f32.vlgmr.msrb.gmra.mxu3 %vm476_vm1, %v716_v11 }
  0xcc   : > { %1122 = vmatmul.msk.f32.gmra.mxu1 %vm476_vm1, %v626_v14 }
  0xcd   : > { %1124 = vmatmul.msk.f32.gmra.mxu2 %vm476_vm1, %v679_v15  ;;  %1135 = vmatmul.msk.f32.vlgmr.msra.gmra.mxu0 %vm444_vm0, %v1496_v8  ;;  %v1196_v15 = vld [vmem:[%s1558_s4] ss:$0 sm:$0xff] }
  0xce   : > { %1126 = vmatmul.msk.f32.gmra.mxu3 %vm476_vm1, %v717_v16  ;;  %v816_v16 = vpop.permute.xlu1 %815 }
  0xd4   : > { %1129 = vmatmul.msk.f32.vlgmr.msra.gmra.mxu1 %vm476_vm1, %v535_v4 }
  0xd5   : > { %1131 = vmatmul.msk.f32.vlgmr.msra.gmra.mxu2 %vm476_vm1, %v573_v5  ;;  %1136 = vmatmul.msk.f32.gmra.mxu0 %vm444_vm0, %v1500_v9  ;;  %v902_v5 = vpop.permute.xlu2 %901 }
  0xdc   : > { %1130 = vmatmul.msk.f32.gmra.mxu1 %vm476_vm1, %v823_v18 }
  0xdd   : > { %1132 = vmatmul.msk.f32.gmra.mxu2 %vm476_vm1, %v861_v19 }
 0x131   : > { %v512_v20 = vpop.f32.mrf.mxu1 }
 0x132   : > { %v530_v43 = vmul.f32 %v523_v24, %v512_v20  ;;  %v907_v24 = vpop.permute.xlu2 %906 }
 0x138   : > { %v564_v25 = vpop.f32.mrf.mxu2 }
 0x139   : > { %v602_v26 = vpop.f32.mrf.mxu3  ;;  %v515_v27 = vpop.f32.mrf.mxu1  ;;  %v570_v45 = vadd.f32 %v564_v25, %v530_v43 }
 0x13a   : > { %v621_v46 = vmul.f32 %v614_v38, %v602_v26  ;;  %v531_v54 = vmul.f32 %v528_v42, %v515_v27  ;;  %v799_v61 = vpop.f32.mrf.mxu0 }
 0x13b   : > { %v818_v3 = vmul.f32 %v811_v53, %v799_v61 }
 0x13c   : > { %v623_v51 = vadd.f32 %v621_v46, %v570_v45 }
 0x140   : > { %v567_v34 = vpop.f32.mrf.mxu2 }
 0x141   : > { %v605_v37 = vpop.f32.mrf.mxu3  ;;  %v655_v39 = vpop.f32.mrf.mxu1  ;;  %v571_v57 = vadd.f32 %v567_v34, %v531_v54 }
 0x142   : > { %v674_v48 = vmul.f32 %v667_v28, %v655_v39  ;;  %v622_v58 = vmul.f32 %v619_v52, %v605_v37  ;;  %v802_v9 = vpop.f32.mrf.mxu0 }
 0x143   : > { %v819_v19 = vmul.f32 %v816_v16, %v802_v9 }
 0x144   : > { %v676_v55 = vadd.f32 %v674_v48, %v623_v51  ;;  %v624_v0 = vadd.f32 %v622_v58, %v571_v57 }
 0x148   : > { %v708_v47 = vpop.f32.mrf.mxu2 }
 0x149   : > { %v746_v49 = vpop.f32.mrf.mxu3  ;;  %v658_v50 = vpop.f32.mrf.mxu1  ;;  %v714_v59 = vadd.f32 %v708_v47, %v676_v55 }
 0x14a   : > { %v765_v60 = vmul.f32 %v758_v36, %v746_v49  ;;  %v675_v63 = vmul.f32 %v672_v56, %v658_v50  ;;  %v987_v31 = vpop.f32.mrf.mxu0 }
 0x14b   : > { %v988_v34 = vadd.f32 %v1198_v32, %v987_v31 }
 0x14c   : > { %v767_v1 = vadd.f32 %v765_v60, %v714_v59  ;;  %v677_v4 = vadd.f32 %v675_v63, %v624_v0 }
 0x14e   : > { %v820_v11 = vadd.f32 %v818_v3, %v767_v1 }
 0x150   : > { %v711_v62 = vpop.f32.mrf.mxu2 }
 0x151   : > { %v749_v2 = vpop.f32.mrf.mxu3  ;;  %v852_v8 = vpop.f32.mrf.mxu1  ;;  %v715_v7 = vadd.f32 %v711_v62, %v677_v4 }
 0x152   : > { %v766_v10 = vmul.f32 %v763_v6, %v749_v2  ;;  %v858_v13 = vadd.f32 %v852_v8, %v820_v11  ;;  %v990_v38 = vpop.f32.mrf.mxu0 }
 0x153   : > { %v991_v40 = vadd.f32 %v1198_v32, %v990_v38 }
 0x154   : > { %v768_v17 = vadd.f32 %v766_v10, %v715_v7 }
 0x156   : > { %v821_v23 = vadd.f32 %v819_v19, %v768_v17 }
 0x158   : > { %v890_v12 = vpop.f32.mrf.mxu2 }
 0x159   : > { %v909_v14 = vmul.f32 %v902_v5, %v890_v12  ;;  %v855_v21 = vpop.f32.mrf.mxu1 }
 0x15a   : > { %v859_v26 = vadd.f32 %v855_v21, %v821_v23 }
 0x15b   : > { %v911_v18 = vadd.f32 %v909_v14, %v858_v13 }
 0x15d   : > { %v917_v20 = vadd.f32 %v1196_v15, %v911_v18 }
 0x15f   : > { %v919_v22 = vmax.f32 %v917_v20, 0.0 }
 0x160   : > { %v893_v25 = vpop.f32.mrf.mxu2 }
 0x161   : > { %v910_v27 = vmul.f32 %v907_v24, %v893_v25  ;;  %1133 = vmatmul.msk.f32.vlgmr.msra.gmra.mxu3 %vm476_vm1, %v919_v22 }
 0x163   : > { %v912_v28 = vadd.f32 %v910_v27, %v859_v26 }
 0x165   : > { %v918_v29 = vadd.f32 %v1196_v15, %v912_v28 }
 0x167   : > { %v920_v30 = vmax.f32 %v918_v29, 0.0 }
 0x169   : > { %1134 = vmatmul.msk.f32.gmra.mxu3 %vm476_vm1, %v920_v30 }
 0x1e4   : > { %v952_v35 = vpop.f32.mrf.mxu3 }
 0x1e5   : > { %v953_v36 = vadd.f32 %v1197_v33, %v952_v35 }
 0x1e7   : > { %v993_v37 = vadd.f32 %v988_v34, %v953_v36 }
 0x1e9   : > { %v995_v39 = vmax.f32 %v993_v37, 0.0 }
 0x1eb   : > { %997 = vst [vmem:[%s428_s20] sm:$0xff] %v995_v39 }
 0x1ec   : > { %v955_v41 = vpop.f32.mrf.mxu3 }
 0x1ed   : > { %v956_v42 = vadd.f32 %v1197_v33, %v955_v41 }
 0x1ef   : > { %v994_v43 = vadd.f32 %v991_v40, %v956_v42 }
 0x1f1   : > { %v996_v44 = vmax.f32 %v994_v43, 0.0 }
 0x1f3   : > { %998 = vst [vmem:[%s428_s20 + $0x8] sm:$0xff] %v996_v44 }
 0x1f4 PF: > { %s23_s13 = sadd.s32 1, %s1337_s13  }
 0x1f5   : > { %p20_p7 = scmp.ge.s32.totalorder %s23_s13, 4  }
 0x1f7   :  { %22 = sbr.rel (!%p20_p7) target bundleno = 3 (0x3), region = 120 }
 0x1fc   :  { %1021 = vsyncpa [#allocation4], 1 }
 0x1fd   :  { %1023 = vsyncpa [#allocation4 + $0x1], 1 }
 0x1fe   :  { %1024 = vsyncpa [#allocation6], 1 }
 0x1ff   :  { %1025 = vsyncpa [#allocation9], 1 }

// kernel: _lambda_.4
= control target key start
LH: loop header
LB: loop body
LE: loop exit
PB: predicated region body
PF: predicated region fallthrough
CT: control target
= control target key end

     0   :  { %13 = vsyncpa [#allocation4], 0  ;;  %s1373_s0 = inlined_call_operand.vmem [shape: f32[32,128], index: 0, kind: input, shape index: {}]   ;;  %s1374_s1 = inlined_call_operand.hbm [shape: f32[128,32], index: 1, kind: input, shape index: {}]   ;;  %s1375_s2 = inlined_call_operand.vmem [shape: f32[1,32], index: 2, kind: input, shape index: {}]   ;;  %s1376_s3 = inlined_call_operand.hbm [shape: f32[9,32,32], index: 3, kind: input, shape index: {}]   ;;  %s1377_s4 = inlined_call_operand.vmem [shape: f32[1,32], index: 4, kind: input, shape index: {}]   ;;  %s1378_s5 = inlined_call_operand.vmem [shape: f32[9,16,1], index: 5, kind: input, shape index: {}]   ;;  %s1379_s6 = inlined_call_operand.hbm [shape: f32[32,128], index: 6, kind: input, shape index: {}]   ;;  %s1380_s7 = inlined_call_operand.vmem [shape: f32[1,128], index: 7, kind: input, shape index: {}]   ;;  %s1381_s8 = inlined_call_operand.vmem [shape: f32[32,128], index: 8, kind: output, shape index: {}]  }
   0x1   :  { %14 = vsyncpa [#allocation6], 0  ;;  %s1235_s27 = smov 0  }
   0x2 LB: > { %s981_s28 = sadd.s32 4294967295, %s1181_s27   ;;  %p983_p0 = scmp.ge.s32.totalorder %s1181_s27, 1  ;;  %s1181_s27 = sphi %s1235_s27, %s20_s27  }
   0x3   : > { %p224_p1 = scmp.lt.s32.totalorder %s1181_s27, 3  ;;  %p1245_p2 = scmp.eq.s32.totalorder %s981_s28, 0 }
   0x4   : > { %s252_s10 = sshll.u32 %s1376_s3, 4  ;;  %s235_s14 = sshll.u32 %s1374_s1, 4  ;;  %s253_s10 = int_to_ptr.hbm [resolvable:$true] %s252_s10  ;;  %s236_s14 = int_to_ptr.hbm [resolvable:$true] %s235_s14 }
   0x5   : > { %p1252_p3 = pnand %p983_p0, %p224_p1  ;;  %s1183_s15 = smov [#allocation5]  }
   0x6   : > { %s254_s16 = sshll.u32 %s1183_s15, 4  ;;  %s1184_s17 = smov [#allocation3]   ;;  %s255_s16 = int_to_ptr.vmem [resolvable:$true] %s254_s16 }
   0x7   : > { %p1040_p4 = pneg %p1252_p3  ;;  %s237_s18 = sshll.u32 %s1184_s17, 4  ;;  %s238_s18 = int_to_ptr.vmem [resolvable:$true] %s237_s18 }
   0x8   : > { %s272_s21 = sshll.u32 %s1379_s6, 4  ;;  %s1185_s22 = smov 128   ;;  %s273_s21 = int_to_ptr.hbm [resolvable:$true] %s272_s21 }
   0x9   : > { %p1041_p5 = pnand %p1245_p2, %p1040_p4  ;;  %s1186_s23 = smov 8  }
   0xa   : > { %s1187_s24 = smov [#allocation7]   ;;  %302 = sbr.rel (%p1252_p3) target bundleno = 503 (0x1f7), region = 52 }
   0xb   : > { %1046 = dma.hbm_to_vmem [thread:$0]  (!%p1041_p5), %s253_s10, 4608, %s255_s16, [#allocation6], %s1185_s22, %s1185_s22, %s1186_s23  }
   0xc   : > { %1043 = dma.hbm_to_vmem [thread:$0]  (!%p1041_p5), %s236_s14, 2048, %s238_s18, [#allocation4], %s1185_s22, %s1185_s22, %s1186_s23  }
   0xd   : > { %s274_s25 = sshll.u32 %s1187_s24, 4  ;;  %s275_s25 = int_to_ptr.vmem [resolvable:$true] %s274_s25 }
   0xe   : > { %1049 = dma.hbm_to_vmem [thread:$0]  (!%p1041_p5), %s273_s21, 512, %s275_s25, [#allocation6], %s1185_s22, %s1185_s22, %s1186_s23  }
   0xf   : > { %1172 = dma.done.wait (%p1245_p2), [#allocation4], 2048  }
  0x10   : > { %1174 = vsyncadd (%p1245_p2), [#allocation4], 4294965248 }
  0x11   : > { %1176 = dma.done.wait (%p1245_p2), [#allocation6], 5120  }
  0x12   : > { %1178 = vsyncadd (%p1245_p2), [#allocation6], 4294962176  ;;  %v376_v0 = vld [vmem:[#allocation3 + $0x78] sm:$0xff]  ;;  %v375_v1 = vld [vmem:[#allocation3 + $0x70] sm:$0xff]  ;;  %s992_s26 = sshll.u32 %s981_s28, 1  ;;  %vm406_vm0 = vcmask 261120  }
  0x13   : > { %381 = vmatpush.msra.mxu0 %v376_v0  ;;  %v374_v2 = vld [vmem:[#allocation3 + $0x68] sm:$0xff]  ;;  %v373_v3 = vld [vmem:[#allocation3 + $0x60] sm:$0xff]  ;;  %v372_v4 = vld [vmem:[#allocation3 + $0x58] sm:$0xff]  ;;  %p348_p6 = scmp.lt.s32.totalorder %s992_s26, 3  ;;  %v1188_v18 = vmov 0.0   ;;  %v1189_v37 = vmov 0  }
  0x14   : > { %v371_v5 = vld [vmem:[#allocation3 + $0x50] sm:$0xff]  ;;  %v370_v6 = vld [vmem:[#allocation3 + $0x48] sm:$0xff]  ;;  %v369_v7 = vld [vmem:[#allocation3 + $0x40] sm:$0xff]  ;;  %407 = vst.msk [vmem:[#allocation2] sm:$0xff] %vm406_vm0, %v1188_v18  ;;  %1071 = vset.pattern.permute.xlu0 %v1189_v37  ;;  %1072 = vset.pattern.permute.xlu1 %v1189_v37 }
  0x15   : > { %382 = vmatpush.msra.mxu0 %v375_v1  ;;  %v368_v8 = vld [vmem:[#allocation3 + $0x38] sm:$0xff]  ;;  %v367_v9 = vld [vmem:[#allocation3 + $0x30] sm:$0xff]  ;;  %v366_v10 = vld [vmem:[#allocation3 + $0x28] sm:$0xff]  ;;  %s1385_s26 = smov (!%p348_p6, %s992_s26), 3  ;;  %408 = vst.msk [vmem:[#allocation2 + $0x8] sm:$0xff] %vm406_vm0, %v1188_v18  ;;  %1073 = vset.pattern.permute.xlu2 %v1189_v37 }
  0x16   : > { %v365_v11 = vld [vmem:[#allocation3 + $0x20] sm:$0xff]  ;;  %v364_v12 = vld [vmem:[#allocation3 + $0x18] sm:$0xff]  ;;  %s993_s29 = sshll.u32 %s1385_s26, 3  ;;  %v363_v13 = vld [vmem:[#allocation3 + $0x10] sm:$0xff]  ;;  %410 = vst.msk [vmem:[#allocation2 + $0x18] sm:$0xff] %vm406_vm0, %v1188_v18 }
  0x17   : > { %383 = vmatpush.msra.mxu0 %v374_v2  ;;  %v362_v14 = vld [vmem:[#allocation3 + $0x8] sm:$0xff]  ;;  %s351_s9 = scalar_lea.vmem %s1373_s0, %s993_s29  ;;  %v361_v15 = vld [vmem:[#allocation3] sm:$0xff]  ;;  %v418_v19 = vld [vmem:[#allocation5 + $0x18] sm:$0xff]  ;;  %409 = vst.msk [vmem:[#allocation2 + $0x10] sm:$0xff] %vm406_vm0, %v1188_v18  ;;  %s357_s23 = scalar_lea.vmem %s1381_s8, %s993_s29 }
  0x18   : > { %v1286_v16 = vld [vmem:[%s351_s9] sm:$0xff]  ;;  %v1289_v17 = vld [vmem:[%s351_s9 + $0x8] sm:$0xff]  ;;  %v470_v20 = vld [vmem:[#allocation5 + $0x38] sm:$0xff]  ;;  %437 = vmatpush.msra.mxu1 %v418_v19 }
  0x19   : > { %384 = vmatpush.msra.mxu0 %v373_v3  ;;  %v508_v21 = vld [vmem:[#allocation5 + $0x58] sm:$0xff]  ;;  %489 = vmatpush.msra.mxu2 %v470_v20  ;;  %v417_v22 = vld [vmem:[#allocation5 + $0x10] sm:$0xff]  ;;  %v416_v25 = vld [vmem:[#allocation5 + $0x8] sm:$0xff] }
  0x1a   : > { %527 = vmatpush.msra.mxu3 %v508_v21  ;;  %v469_v23 = vld [vmem:[#allocation5 + $0x30] sm:$0xff]  ;;  %438 = vmatpush.msra.mxu1 %v417_v22  ;;  %v468_v26 = vld [vmem:[#allocation5 + $0x28] sm:$0xff]  ;;  %v415_v28 = vld [vmem:[#allocation5] sm:$0xff] }
  0x1b   : > { %385 = vmatpush.msra.mxu0 %v372_v4  ;;  %v507_v24 = vld [vmem:[#allocation5 + $0x50] sm:$0xff]  ;;  %490 = vmatpush.msra.mxu2 %v469_v23  ;;  %v506_v27 = vld [vmem:[#allocation5 + $0x48] sm:$0xff]  ;;  %v467_v29 = vld [vmem:[#allocation5 + $0x20] sm:$0xff] }
  0x1c   : > { %528 = vmatpush.msra.mxu3 %v507_v24  ;;  %439 = vmatpush.msra.mxu1 %v416_v25  ;;  %v505_v30 = vld [vmem:[#allocation5 + $0x40] sm:$0xff]  ;;  %v614_v31 = vld [vmem:[#allocation5 + $0x98] sm:$0xff]  ;;  %v613_v35 = vld [vmem:[#allocation5 + $0x90] sm:$0xff] }
  0x1d   : > { %386 = vmatpush.msra.mxu0 %v371_v5  ;;  %491 = vmatpush.msra.mxu2 %v468_v26  ;;  %v652_v32 = vld [vmem:[#allocation5 + $0xb8] sm:$0xff]  ;;  %v448_v34 = vld [vmem:[%s1378_s5] sm:$0xff]  ;;  %v651_v36 = vld [vmem:[#allocation5 + $0xb0] sm:$0xff] }
  0x1e   : > { %529 = vmatpush.msra.mxu3 %v506_v27  ;;  %440 = vmatpush.msra.mxu1 %v415_v28  ;;  %v561_v33 = vld [vmem:[#allocation5 + $0x78] sm:$0xff]  ;;  %v1006_v38 = vld [vmem:[%s1378_s5 + $0x30] sm:$0xff]  ;;  %v612_v40 = vld [vmem:[#allocation5 + $0x88] sm:$0xff] }
  0x1f   : > { %387 = vmatpush.msra.mxu0 %v370_v6  ;;  %492 = vmatpush.msra.mxu2 %v467_v29  ;;  %v560_v39 = vld [vmem:[#allocation5 + $0x70] sm:$0xff]  ;;  %v650_v41 = vld [vmem:[#allocation5 + $0xa8] sm:$0xff]  ;;  %v1002_v43 = vld [vmem:[%s1378_s5 + $0x20] sm:$0xff] }
  0x20   : > { %530 = vmatpush.msra.mxu3 %v505_v30  ;;  %580 = vmatpush.msrb.mxu1 %v561_v33  ;;  %v559_v42 = vld [vmem:[#allocation5 + $0x68] sm:$0xff]  ;;  %v611_v44 = vld [vmem:[#allocation5 + $0x80] sm:$0xff]  ;;  %v1007_v51 = vld [vmem:[%s1378_s5 + $0x38] sm:$0xff] }
  0x21   : > { %388 = vmatpush.msra.mxu0 %v369_v7  ;;  %633 = vmatpush.msrb.mxu2 %v614_v31  ;;  %v649_v45 = vld [vmem:[#allocation5 + $0xa0] sm:$0xff]  ;;  %v449_v46 = vld [vmem:[%s1378_s5 + $0x8] sm:$0xff]  ;;  %v1013_v54 = vld [vmem:[%s1378_s5 + $0x58] sm:$0xff] }
  0x22   : > { %671 = vmatpush.msrb.mxu3 %v652_v32  ;;  %452 = vperm.xlu0 %1071, %v448_v34   ;;  %v558_v47 = vld [vmem:[#allocation5 + $0x60] sm:$0xff]  ;;  %v1017_v56 = vld [vmem:[%s1378_s5 + $0x68] sm:$0xff]  ;;  %v758_v59 = vld [vmem:[#allocation5 + $0xf8] sm:$0xff] }
  0x23   : > { %389 = vmatpush.msra.mxu0 %v368_v8  ;;  %634 = vmatpush.msrb.mxu2 %v613_v35  ;;  %v1074_v48 = vld [vmem:[%s1375_s2] ss:$0 sm:$0xff]  ;;  %v796_v60 = vld [vmem:[#allocation5 + $0x118] sm:$0xff]  ;;  %v757_v1 = vld [vmem:[#allocation5 + $0xf0] sm:$0xff] }
  0x24   : > { %672 = vmatpush.msrb.mxu3 %v651_v36  ;;  %596 = vperm.xlu1 %1072, %v1006_v38   ;;  %v1016_v49 = vld [vmem:[%s1378_s5 + $0x60] sm:$0xff]  ;;  %v705_v61 = vld [vmem:[#allocation5 + $0xd8] sm:$0xff]  ;;  %v795_v2 = vld [vmem:[#allocation5 + $0x110] sm:$0xff] }
  0x25   : > { %390 = vmatpush.msra.mxu0 %v367_v9  ;;  %581 = vmatpush.msrb.mxu1 %v560_v39  ;;  %v704_v3 = vld [vmem:[#allocation5 + $0xd0] sm:$0xff]  ;;  %v756_v5 = vld [vmem:[#allocation5 + $0xe8] sm:$0xff]  ;;  %v755_v8 = vld [vmem:[#allocation5 + $0xe0] sm:$0xff] }
  0x26   : > { %635 = vmatpush.msrb.mxu2 %v612_v40  ;;  %673 = vmatpush.msrb.mxu3 %v650_v41  ;;  %v1012_v4 = vld [vmem:[%s1378_s5 + $0x50] sm:$0xff]  ;;  %v794_v6 = vld [vmem:[#allocation5 + $0x108] sm:$0xff]  ;;  %v793_v9 = vld [vmem:[#allocation5 + $0x100] sm:$0xff] }
  0x27   : > { %391 = vmatpush.msra.mxu0 %v366_v10  ;;  %582 = vmatpush.msrb.mxu1 %v559_v42  ;;  %v703_v7 = vld [vmem:[#allocation5 + $0xc8] sm:$0xff]  ;;  %v702_v10 = vld [vmem:[#allocation5 + $0xc0] sm:$0xff]  ;;  %v854_v29 = vld [vmem:[#allocation7 + $0x18] sm:$0xff] }
  0x28   : > { %636 = vmatpush.msrb.mxu2 %v611_v44  ;;  %674 = vmatpush.msrb.mxu3 %v649_v45  ;;  %v1022_v20 = vld [vmem:[%s1378_s5 + $0x80] sm:$0xff]  ;;  %v1023_v24 = vld [vmem:[%s1378_s5 + $0x88] sm:$0xff]  ;;  %v853_v30 = vld [vmem:[#allocation7 + $0x10] sm:$0xff] }
  0x29   : > { %392 = vmatpush.msra.mxu0 %v365_v11  ;;  %583 = vmatpush.msrb.mxu1 %v558_v47  ;;  %v852_v37 = vld [vmem:[#allocation7 + $0x8] sm:$0xff]  ;;  %v851_v38 = vld [vmem:[#allocation7] sm:$0xff] }
  0x2a   : > { %543 = vperm.xlu0 %1071, %v1002_v43   ;;  %687 = vperm.xlu2 %1073, %v1012_v4  }
  0x2b   : > { %393 = vmatpush.msra.mxu0 %v364_v12 }
  0x2c   : > { %457 = vperm.xlu1 %1072, %v449_v46  }
  0x2d   : > { %394 = vmatpush.msra.mxu0 %v363_v13 }
  0x2f   : > { %395 = vmatpush.msra.mxu0 %v362_v14  ;;  %v1003_v14 = vld [vmem:[%s1378_s5 + $0x28] sm:$0xff] }
  0x31   : > { %396 = vmatpush.msra.mxu0 %v361_v15 }
  0x32   : > { %397 = vmatmul.f32.vlgmr.msra.gmra.mxu0 %v1286_v16  ;;  %740 = vperm.xlu0 %1071, %v1016_v49  }
  0x33   : > { %548 = vperm.xlu2 %1073, %v1003_v14   ;;  %877 = vmatpush.msrb.mxu0 %v854_v29 }
  0x34   : > { %601 = vperm.xlu1 %1072, %v1007_v51  }
  0x35   : > { %878 = vmatpush.msrb.mxu0 %v853_v30 }
  0x37   : > { %879 = vmatpush.msrb.mxu0 %v852_v37 }
  0x39   : > { %880 = vmatpush.msrb.mxu0 %v851_v38 }
  0x3a   : > { %400 = vmatmul.f32.gmra.mxu0 %v1289_v17  ;;  %692 = vperm.xlu0 %1071, %v1013_v54  }
  0x3b   : > { %831 = vperm.xlu2 %1073, %v1022_v20  }
  0x3c   : > { %745 = vperm.xlu1 %1072, %v1017_v56  }
  0x43   : > { %836 = vperm.xlu2 %1073, %v1023_v24  }
  0x84   : > { %v688_v41 = vpop.permute.xlu2 %687 }
  0x8d   : > { %v549_v51 = vpop.permute.xlu2 %548 }
  0x94   : > { %v453_v33 = vpop.permute.xlu0 %452 }
  0x95   : > { %v832_v4 = vpop.permute.xlu2 %831 }
  0x96   : > { %v597_v35 = vpop.permute.xlu1 %596 }
  0x9c   : > { %v544_v42 = vpop.permute.xlu0 %543 }
  0x9e   : > { %v458_v43 = vpop.permute.xlu1 %457 }
  0xa6   : > { %v602_v56 = vpop.permute.xlu1 %601 }
  0xaf   : > { %v398_v50 = vpop.f32.mrf.mxu0 }
  0xb0   : > { %v399_v52 = vadd.f32 %v1074_v48, %v398_v50 }
  0xb2   : > { %v404_v53 = vmax.f32 %v399_v52, 0.0 }
  0xb4   : > { %411 = vst.msk [vmem:[#allocation2 + $0x8] sm:$0xff] %vm406_vm0, %v404_v53  ;;  %v741_v53 = vpop.permute.xlu0 %740 }
  0xb7   : > { %v401_v55 = vpop.f32.mrf.mxu0 }
  0xb8   : > { %v402_v57 = vadd.f32 %v1074_v48, %v401_v55 }
  0xba   : > { %v405_v58 = vmax.f32 %v402_v57, 0.0 }
  0xbb   : > { %v413_v62 = vld [vmem:[#allocation2 + $0x3] sm:$0xff] }
  0xbc   : > { %v464_v63 = vld [vmem:[#allocation2 + $0x4] sm:$0xff]  ;;  %412 = vst.msk [vmem:[#allocation2 + $0x10] sm:$0xff] %vm406_vm0, %v405_v58  ;;  %996 = vmatmul.msk.f32.vlgmr.msra.gmra.mxu1 %vm406_vm0, %v413_v62 }
  0xbd   : > { %v502_v0 = vld [vmem:[#allocation2 + $0x5] sm:$0xff]  ;;  %998 = vmatmul.msk.f32.vlgmr.msra.gmra.mxu2 %vm406_vm0, %v464_v63  ;;  %724 = vmatpush.msra.mxu1 %v705_v61 }
  0xbe   : > { %1000 = vmatmul.msk.f32.vlgmr.msra.gmra.mxu3 %vm406_vm0, %v502_v0  ;;  %777 = vmatpush.msra.mxu2 %v758_v59  ;;  %v555_v15 = vld [vmem:[#allocation2 + $0x7] sm:$0xff] }
  0xbf   : > { %815 = vmatpush.msra.mxu3 %v796_v60  ;;  %725 = vmatpush.msra.mxu1 %v704_v3  ;;  %v608_v18 = vld [vmem:[#allocation2 + $0x8] sm:$0xff] }
  0xc0   : > { %778 = vmatpush.msra.mxu2 %v757_v1 }
  0xc1   : > { %816 = vmatpush.msra.mxu3 %v795_v2  ;;  %726 = vmatpush.msra.mxu1 %v703_v7  ;;  %v693_v7 = vpop.permute.xlu0 %692 }
  0xc2   : > { %779 = vmatpush.msra.mxu2 %v756_v5 }
  0xc3   : > { %817 = vmatpush.msra.mxu3 %v794_v6  ;;  %v414_v11 = vld [vmem:[#allocation2 + $0xb] sm:$0xff]  ;;  %727 = vmatpush.msra.mxu1 %v702_v10  ;;  %v700_v25 = vld [vmem:[#allocation2 + $0x13] sm:$0xff] }
  0xc4   : > { %v465_v12 = vld [vmem:[#allocation2 + $0xc] sm:$0xff]  ;;  %780 = vmatpush.msra.mxu2 %v755_v8  ;;  %997 = vmatmul.msk.f32.gmra.mxu1 %vm406_vm0, %v414_v11  ;;  %v753_v26 = vld [vmem:[#allocation2 + $0x14] sm:$0xff] }
  0xc5   : > { %v503_v13 = vld [vmem:[#allocation2 + $0xd] sm:$0xff]  ;;  %999 = vmatmul.msk.f32.gmra.mxu2 %vm406_vm0, %v465_v12  ;;  %818 = vmatpush.msra.mxu3 %v793_v9  ;;  %v791_v27 = vld [vmem:[#allocation2 + $0x15] sm:$0xff] }
  0xc6   : > { %1001 = vmatmul.msk.f32.gmra.mxu3 %vm406_vm0, %v503_v13  ;;  %v646_v19 = vld [vmem:[#allocation2 + $0x9] sm:$0xff]  ;;  %v647_v23 = vld [vmem:[#allocation2 + $0x11] sm:$0xff] }
  0xc7   : > { %v556_v21 = vld [vmem:[#allocation2 + $0xf] sm:$0xff] }
  0xc8   : > { %v609_v22 = vld [vmem:[#allocation2 + $0x10] sm:$0xff] }
  0xcc   : > { %1004 = vmatmul.msk.f32.vlgmr.msrb.gmra.mxu1 %vm406_vm0, %v555_v15  ;;  %v1075_v15 = vld [vmem:[%s1377_s4] ss:$0 sm:$0xff] }
  0xcd   : > { %1008 = vmatmul.msk.f32.vlgmr.msrb.gmra.mxu2 %vm406_vm0, %v608_v18 }
  0xce   : > { %1010 = vmatmul.msk.f32.vlgmr.msrb.gmra.mxu3 %vm406_vm0, %v646_v19 }
  0xd4   : > { %1005 = vmatmul.msk.f32.gmra.mxu1 %vm406_vm0, %v556_v21 }
  0xd5   : > { %1009 = vmatmul.msk.f32.gmra.mxu2 %vm406_vm0, %v609_v22 }
  0xd6   : > { %1011 = vmatmul.msk.f32.gmra.mxu3 %vm406_vm0, %v647_v23 }
  0xdc   : > { %1014 = vmatmul.msk.f32.vlgmr.msra.gmra.mxu1 %vm406_vm0, %v414_v11 }
  0xdd   : > { %1018 = vmatmul.msk.f32.vlgmr.msra.gmra.mxu2 %vm406_vm0, %v465_v12 }
  0xde   : > { %1020 = vmatmul.msk.f32.vlgmr.msra.gmra.mxu3 %vm406_vm0, %v503_v13  ;;  %v746_v13 = vpop.permute.xlu1 %745 }
  0xe4   : > { %1015 = vmatmul.msk.f32.gmra.mxu1 %vm406_vm0, %v700_v25 }
  0xe5   : > { %1019 = vmatmul.msk.f32.gmra.mxu2 %vm406_vm0, %v753_v26  ;;  %v837_v26 = vpop.permute.xlu2 %836 }
  0xe6   : > { %1021 = vmatmul.msk.f32.gmra.mxu3 %vm406_vm0, %v791_v27 }
 0x139   : > { %v442_v28 = vpop.f32.mrf.mxu1 }
 0x13a   : > { %v460_v44 = vmul.f32 %v453_v33, %v442_v28  ;;  %v1076_v33 = vld [vmem:[%s1380_s7] ss:$0 sm:$0xff] }
 0x140   : > { %v494_v31 = vpop.f32.mrf.mxu2 }
 0x141   : > { %v532_v32 = vpop.f32.mrf.mxu3  ;;  %v445_v34 = vpop.f32.mrf.mxu1  ;;  %v500_v46 = vadd.f32 %v494_v31, %v460_v44 }
 0x142   : > { %v551_v47 = vmul.f32 %v544_v42, %v532_v32  ;;  %v461_v54 = vmul.f32 %v458_v43, %v445_v34 }
 0x144   : > { %v553_v52 = vadd.f32 %v551_v47, %v500_v46 }
 0x148   : > { %v497_v36 = vpop.f32.mrf.mxu2 }
 0x149   : > { %v535_v39 = vpop.f32.mrf.mxu3  ;;  %v585_v40 = vpop.f32.mrf.mxu1  ;;  %v501_v58 = vadd.f32 %v497_v36, %v461_v54 }
 0x14a   : > { %v604_v50 = vmul.f32 %v597_v35, %v585_v40  ;;  %v552_v59 = vmul.f32 %v549_v51, %v535_v39 }
 0x14c   : > { %v606_v55 = vadd.f32 %v604_v50, %v553_v52  ;;  %v554_v2 = vadd.f32 %v552_v59, %v501_v58 }
 0x150   : > { %v638_v45 = vpop.f32.mrf.mxu2 }
 0x151   : > { %v676_v48 = vpop.f32.mrf.mxu3  ;;  %v588_v49 = vpop.f32.mrf.mxu1  ;;  %v644_v60 = vadd.f32 %v638_v45, %v606_v55 }
 0x152   : > { %v695_v61 = vmul.f32 %v688_v41, %v676_v48  ;;  %v605_v0 = vmul.f32 %v602_v56, %v588_v49 }
 0x154   : > { %v697_v3 = vadd.f32 %v695_v61, %v644_v60  ;;  %v607_v5 = vadd.f32 %v605_v0, %v554_v2 }
 0x158   : > { %v641_v57 = vpop.f32.mrf.mxu2 }
 0x159   : > { %v679_v62 = vpop.f32.mrf.mxu3  ;;  %v729_v63 = vpop.f32.mrf.mxu1  ;;  %v645_v9 = vadd.f32 %v641_v57, %v607_v5 }
 0x15a   : > { %v748_v1 = vmul.f32 %v741_v53, %v729_v63  ;;  %v696_v10 = vmul.f32 %v693_v7, %v679_v62 }
 0x15c   : > { %v750_v6 = vadd.f32 %v748_v1, %v697_v3  ;;  %v698_v21 = vadd.f32 %v696_v10, %v645_v9 }
 0x160   : > { %v782_v8 = vpop.f32.mrf.mxu2 }
 0x161   : > { %v788_v11 = vadd.f32 %v782_v8, %v750_v6  ;;  %v820_v12 = vpop.f32.mrf.mxu3  ;;  %v732_v18 = vpop.f32.mrf.mxu1 }
 0x162   : > { %v839_v14 = vmul.f32 %v832_v4, %v820_v12  ;;  %v749_v19 = vmul.f32 %v746_v13, %v732_v18 }
 0x164   : > { %v841_v20 = vadd.f32 %v839_v14, %v788_v11  ;;  %v751_v23 = vadd.f32 %v749_v19, %v698_v21 }
 0x166   : > { %v847_v22 = vadd.f32 %v1075_v15, %v841_v20 }
 0x168   : > { %v849_v24 = vmax.f32 %v847_v22, 0.0  ;;  %v785_v25 = vpop.f32.mrf.mxu2 }
 0x169   : > { %v789_v27 = vadd.f32 %v785_v25, %v751_v23  ;;  %v823_v28 = vpop.f32.mrf.mxu3 }
 0x16a   : > { %v840_v29 = vmul.f32 %v837_v26, %v823_v28  ;;  %1024 = vmatmul.msk.f32.vlgmr.msrb.gmra.mxu0 %vm406_vm0, %v849_v24 }
 0x16c   : > { %v842_v30 = vadd.f32 %v840_v29, %v789_v27 }
 0x16e   : > { %v848_v31 = vadd.f32 %v1075_v15, %v842_v30 }
 0x170   : > { %v850_v32 = vmax.f32 %v848_v31, 0.0 }
 0x172   : > { %1025 = vmatmul.msk.f32.gmra.mxu0 %vm406_vm0, %v850_v32 }
 0x1e7   : > { %v882_v34 = vpop.f32.mrf.mxu0 }
 0x1e8   : > { %v883_v35 = vadd.f32 %v1076_v33, %v882_v34 }
 0x1ea   : > { %v888_v36 = vadd.f32 %v883_v35, %v1286_v16 }
 0x1ec   : > { %v890_v37 = vmax.f32 %v888_v36, 0.0 }
 0x1ee   : > { %892 = vst [vmem:[%s357_s23] sm:$0xff] %v890_v37 }
 0x1ef   : > { %v885_v38 = vpop.f32.mrf.mxu0 }
 0x1f0   : > { %v886_v39 = vadd.f32 %v1076_v33, %v885_v38 }
 0x1f2   : > { %v889_v40 = vadd.f32 %v886_v39, %v1289_v17 }
 0x1f4   : > { %v891_v41 = vmax.f32 %v889_v40, 0.0 }
 0x1f6   : > { %893 = vst [vmem:[%s357_s23 + $0x8] sm:$0xff] %v891_v41 }
 0x1f7 PF: > { %s20_s27 = sadd.s32 1, %s1181_s27  }
 0x1f8   : > { %p17_p7 = scmp.ge.s32.totalorder %s20_s27, 4  }
 0x1fa   :  { %19 = sbr.rel (!%p17_p7) target bundleno = 2 (0x2), region = 108 }
 0x1ff   :  { %916 = vsyncpa [#allocation4], 1 }
 0x200   :  { %918 = vsyncpa [#allocation4 + $0x1], 1 }
 0x201   :  { %919 = vsyncpa [#allocation6], 1 }

</bundles_post_ra>
